<compile_context>
chip_gen: v7x
topology: tpu7x:2x2x1
jax: 0.10.0
libtpu: 0.0.40
codegen_flags: <defaults>
</compile_context>

<pallas_src>
import jax
import jax.numpy as jnp
from jax.experimental import pallas as pl
from jax.experimental.pallas import tpu as pltpu


_MIN_PALLAS_BYTES = 512 * 1024        # below this, pallas_call overhead dominates
_MIN_LANE_DIM = 128                   # trailing dims below this -> lane-sparse stores; use XLA
_TILE_CAP = 512                       # lane/sublane tile cap (multiple of 128)
_STEP_BYTES_BUDGET = 4 * 1024 * 1024  # per-step input-tile byte budget (~4 MiB)
_VMEM_LIMIT_BYTES = 40 << 20          # double-buffered in+out tiles <= 16 MiB, plus headroom


def _transpose_last2_kernel(x_ref, o_ref):
    # x_ref: (nb, tL, tC) -> o_ref: (nb, tC, tL); lane<->sublane transpose on the XLU.
    # TODO(synk): if a bundle dump ever shows the XLU/VPU (not DMA) as the critical
    # slot for bf16/int8, pack row pairs to u32 via pltpu.bitcast and fix the
    # interleave with pltpu.roll instead of a narrow-dtype transpose.
    o_ref[...] = jnp.swapaxes(x_ref[...], -1, -2)


def _pick_tile(n, cap=_TILE_CAP):
    """Largest multiple of 128 that is <= min(cap, n). Requires n >= 128."""
    return min(cap, 128 * (n // 128))


def _transpose_trailing2_pallas(x):
    """Swap the last two dims of `x` (both >= 128) with a tiled Pallas kernel."""
    *lead_shape, L, C = x.shape
    NB = 1
    for d in lead_shape:
        NB *= d
    x3 = x.reshape(NB, L, C)  # collapsing leading dims is a metadata-only reshape

    itemsize = jnp.dtype(x.dtype).itemsize
    tL = _pick_tile(L)
    tC = _pick_tile(C)

    # Fold batch into the block up to the per-step byte budget (fewer, larger DMAs).
    nb = max(1, min(NB, _STEP_BYTES_BUDGET // (tL * tC * itemsize)))

    # Keep >= 2 grid steps when possible so the pipeline has work to overlap and
    # v7x megacore sharding has something to split across the two TensorCores.
    if pl.cdiv(NB, nb) * pl.cdiv(L, tL) * pl.cdiv(C, tC) < 2:
        if NB >= 2:
            nb = pl.cdiv(NB, 2)
        elif tL >= 256:
            tL //= 2

    grid = (pl.cdiv(NB, nb), pl.cdiv(L, tL), pl.cdiv(C, tC))
    bytes_accessed = 2 * int(x.size) * itemsize  # pure HBM-bandwidth op

    out3 = pl.pallas_call(
        _transpose_last2_kernel,
        out_shape=jax.ShapeDtypeStruct((NB, C, L), x.dtype),
        grid=grid,
        in_specs=[pl.BlockSpec((nb, tL, tC), lambda n, i, j: (n, i, j))],
        out_specs=pl.BlockSpec((nb, tC, tL), lambda n, i, j: (n, j, i)),
        compiler_params=pltpu.CompilerParams(
            dimension_semantics=("parallel",) * len(grid),
            vmem_limit_bytes=_VMEM_LIMIT_BYTES),
        cost_estimate=pl.CostEstimate(
            flops=0, transcendentals=0, bytes_accessed=bytes_accessed),
    )(x3)

    return out3.reshape(tuple(lead_shape) + (C, L))


def transpose_pallas(x, dim0, dim1):
    nd = x.ndim
    if nd < 2:
        # torch only allows the (trivial) identity transpose on 0-D / 1-D tensors.
        return x
    d0, d1 = sorted((dim0 % nd, dim1 % nd))
    if d0 == d1:
        return x
    if d0 == nd - 2 and d1 == nd - 1:
        L, C = x.shape[-2], x.shape[-1]
        total_bytes = int(x.size) * jnp.dtype(x.dtype).itemsize
        if min(L, C) >= _MIN_LANE_DIM and total_bytes >= _MIN_PALLAS_BYTES:
            # Real lane<->sublane transpose, big enough to be worth a kernel launch.
            return _transpose_trailing2_pallas(x)
        # Tiny / lane-sparse trailing transposes: XLA's fused transpose wins.
        return jnp.swapaxes(x, d0, d1)
    # Leading-dim or mixed swaps are pure relayout copies (no in-kernel compute
    # to hide); XLA's transpose emitter is already HBM-bound and can fuse.
    # TODO(synk): single-kernel Pallas path for mixed leading/trailing swaps.
    return jnp.swapaxes(x, d0, d1)


class Transpose:
    """Pallas equivalent of the PyTorch Transpose module (no parameters)."""

    def __init__(self, dim0, dim1):
        self.dim0 = dim0
        self.dim1 = dim1

    def __call__(self, x):
        return transpose_pallas(x, self.dim0, self.dim1)


if __name__ == "__main__":
    keys = jax.random.split(jax.random.PRNGKey(0), 6)

    # 1) Canonical conv1d <-> attention layout swap on a small activation:
    #    routed to XLA by the size/L<128 threshold (launch overhead > copy cost).
    x1 = jax.random.normal(keys[0], (2, 16, 128), dtype=jnp.float32)
    y1 = Transpose(1, 2)(x1)
    jax.block_until_ready(y1)
    assert y1.shape == (2, 128, 16) and y1.dtype == x1.dtype
    assert jnp.array_equal(y1, jnp.swapaxes(x1, 1, 2)), "mismatch: (2,16,128) f32"

    # 2) Pallas path with an in-kernel remainder tile along L (200 = 128 + 72).
    x2 = jax.random.normal(keys[1], (4, 200, 256), dtype=jnp.float32)
    y2 = Transpose(-2, -1)(x2)
    jax.block_until_ready(y2)
    assert jnp.array_equal(y2, jnp.swapaxes(x2, 1, 2)), "mismatch: (4,200,256) f32"

    # 3) Pallas path: L=384 gets a 384-wide tile (not 128), C=640 has a 128-wide
    #    remainder block handled in-kernel (no pad/slice round trip).
    x3 = jax.random.normal(keys[2], (2, 384, 640), dtype=jnp.float32)
    y3 = Transpose(1, 2)(x3)
    jax.block_until_ready(y3)
    assert jnp.array_equal(y3, jnp.swapaxes(x3, 1, 2)), "mismatch: (2,384,640) f32"

    # 4) bf16 Pallas path with batch folded into the block (nb > 1).
    x4 = jax.random.normal(keys[3], (8, 256, 384), dtype=jnp.bfloat16)
    y4 = Transpose(1, 2)(x4)
    jax.block_until_ready(y4)
    assert jnp.array_equal(y4, jnp.swapaxes(x4, 1, 2)), "mismatch: (8,256,384) bf16"

    # 5) 4-D input, trailing swap: leading dims flattened into the batch block.
    x5 = jax.random.normal(keys[4], (2, 3, 256, 256), dtype=jnp.float32)
    y5 = Transpose(2, 3)(x5)
    jax.block_until_ready(y5)
    assert jnp.array_equal(y5, jnp.swapaxes(x5, 2, 3)), "mismatch: (2,3,256,256) f32"

    # 6) Leading-dims-only swap: pure relayout, routed to XLA.
    x6 = jax.random.normal(keys[5], (2, 4, 16, 128), dtype=jnp.float32)
    y6 = Transpose(0, 1)(x6)
    jax.block_until_ready(y6)
    assert jnp.array_equal(y6, jnp.swapaxes(x6, 0, 1)), "mismatch: swap(0,1)"

    print("KERNEL_OK")
</pallas_src>

<mosaic_0001>
module attributes {stable_mosaic.version = 11 : i64} {
  func.func @_transpose_last2_kernel(%arg0: i32, %arg1: i32, %arg2: i32, %arg3: memref<4x128x256xf32, #tpu.memory_space<vmem>>, %arg4: memref<4x256x128xf32, #tpu.memory_space<vmem>>) attributes {dimension_semantics = [#tpu.dimension_semantics<parallel>, #tpu.dimension_semantics<parallel>, #tpu.dimension_semantics<parallel>], iteration_bounds = array<i64: 1, 2, 1>, scalar_prefetch = 0 : i64, scratch_operands = 0 : i64, tpu.core_type = #tpu.core_type<tc>, window_params = [{transform_indices = @transform_0, window_bounds = array<i64: 4, 128, 256>}, {transform_indices = @transform_1, window_bounds = array<i64: 4, 256, 128>}]} {
    %c0 = arith.constant 0 : index
    %c0_0 = arith.constant 0 : index
    %c0_1 = arith.constant 0 : index
    %0 = vector.load %arg3[%c0, %c0_0, %c0_1] : memref<4x128x256xf32, #tpu.memory_space<vmem>>, vector<4x128x256xf32>
    %1 = tpu.transpose %0, [0, 2, 1] : vector<4x128x256xf32> -> vector<4x256x128xf32>
    %c0_2 = arith.constant 0 : index
    %c0_3 = arith.constant 0 : index
    %c0_4 = arith.constant 0 : index
    %2 = vector.load %arg4[%c0_2, %c0_3, %c0_4] : memref<4x256x128xf32, #tpu.memory_space<vmem>>, vector<4x256x128xf32>
    tpu.vector_store %arg4[%c0_2, %c0_3, %c0_4], %1 {strides = array<i32>} : memref<4x256x128xf32, #tpu.memory_space<vmem>>, vector<4x256x128xf32>,
    return
  }
  func.func @transform_0(%arg0: i32, %arg1: i32, %arg2: i32) -> (i32, i32, i32) {
    %c0_i32 = arith.constant 0 : i32
    return %arg0, %arg1, %arg2 : i32, i32, i32
  }
  func.func @transform_1(%arg0: i32, %arg1: i32, %arg2: i32) -> (i32, i32, i32) {
    %c0_i32 = arith.constant 0 : i32
    return %arg0, %arg2, %arg1 : i32, i32, i32
  }
}

</mosaic_0001>

<bundles_post_ra>
// kernel: tpu_custom_call.1
= control target key start
LH: loop header
LB: loop body
LE: loop exit
PB: predicated region body
PF: predicated region fallthrough
CT: control target
= control target key end

     0   :  { %6 = vsyncpa [#allocation3], 0  ;;  %s2116_s0 = inlined_call_operand.hbm [shape: f32[4,200,256], index: 0, kind: input, shape index: {}]   ;;  %s2117_s1 = inlined_call_operand.vmem [shape: f32[4,256,200], index: 1, kind: output, shape index: {}]  }
   0x1   :  { %8 = vsyncpa [#allocation3 + $0x1], 0  ;;  %s1505_s6 = smov 0   ;;  %s1507_s7 = smov 0  }
   0x2   :  { %s1509_s8 = smov 0   ;;  %s1511_s9 = smov 0  }
   0x3   :  { %s1513_s10 = smov 0   ;;  %s1515_s11 = smov 0  }
   0x4 LB: > { %s1356_s12 = sadd.s32 4294967295, %s1488_s11   ;;  %s29_s13 = sadd.s32 1, %s1484_s10  ;;  %s1488_s11 = sphi %s1515_s11, %s14_s11   ;;  %s1484_s10 = sphi %s1513_s10, %s2124_s10   ;;  %s1480_s9 = sphi %s1511_s9, %s2123_s9   ;;  %s1476_s8 = sphi %s1509_s8, %s2122_s8   ;;  %s1472_s7 = sphi %s1507_s7, %s2121_s7   ;;  %s1468_s6 = sphi %s1505_s6, %s2120_s6  }
   0x5   : > { %p31_p0 = scmp.ge.s32.totalorder %s29_s13, 2  ;;  %s44_s14 = sadd.s32 1, %s1476_s8 }
   0x6   : > { %p51_p1 = scmp.ne.s32.totalorder %s1476_s8, %s1472_s7  ;;  %p52_p2 = scmp.eq.s32.totalorder %s1488_s11, 0 }
   0x7   : > { %s2126_s13 = smov (%p31_p0, %s29_s13), 0  ;;  %p57_p4 = scmp.ne.s32.totalorder %s1472_s7, %s1468_s6 }
   0x8   : > { %p53_p3 = por %p52_p2, %p51_p1  ;;  %s38_s15 = ssub.s32 %s1484_s10, %s2126_s13 }
   0x9   : > { %p58_p5 = scmp.eq.s32.totalorder %s1356_s12, 0  ;;  %p42_p6 = scmp.eq.s32.totalorder %s38_s15, 0 }
   0xa   : > { %p85_p7 = scmp.eq.s32.totalorder %s1356_s12, 1  ;;  %p1359_p10 = scmp.ge.s32.totalorder %s1488_s11, 2 }
   0xb   : > { %p1544_p8 = por %p58_p5, %p57_p4 }
   0xc   : > { %s1549_s17 = scalar_select %p42_p6, %s1476_s8, %s44_s14  }
   0xd   : > { %p1551_p9 = por %p85_p7, %p51_p1  ;;  %107 = sbr.rel (%p1359_p10) target bundleno = 44 (0x2c), region = 16 }
  0x14   : > { %110 = sbr.rel (!%p53_p3) target bundleno = 44 (0x2c), region = 20 }
  0x1b   : > { %s111_s19 = sand.u32 1, %s1476_s8   ;;  %s1361_s20 = sshll.u32 %s1484_s10, 4 }
  0x1c   : > { %s1360_s21 = sshll.u32 %s111_s19, 10  ;;  %s119_s22 = ssub.s32 25, %s1361_s20 }
  0x1d   : > { %p120_p11 = scmp.lt.s32.totalorder %s119_s22, 16  ;;  %s112_s25 = scalar_lea.sflag [#allocation3], %s111_s19 }
  0x1e   : > { %s115_s26 = scalar_lea.vmem [#allocation2], %s1360_s21 }
  0x1f   : > { %s2128_s22 = smov (!%p120_p11, %s119_s22), 16 }
  0x20   : > { %s1379_s23 = sshll.u32 %s2128_s22, 10 }
  0x21   : > { %s125_s24 = ssub.s32 16384, %s1379_s23 }
  0x22   : > { %126 = vsyncadd %s112_s25, %s125_s24  ;;  %p1364_p12 = scmp.ne.s32.totalorder %s1379_s23, 0  ;;  %s1381_s27 = sshll.u32 %s1484_s10, 12 }
  0x23   : > { %s133_s30 = scalar_lea.hbm %s2116_s0, %s1381_s27  ;;  %s140_s2 = sld [smem:[#allocation0]]  }
  0x24   : > { %s148_s3 = sshll.u32 %s115_s26, 4  ;;  %s1490_s4 = smov 6400   ;;  %s149_s3 = int_to_ptr.vmem [resolvable:$true] %s148_s3 }
  0x25   : > { %155 = sst [smem:[#allocation6]] %s1490_s4  ;;  %s1491_s5 = smov 4096  }
  0x26   : > { %159 = sst [smem:[#allocation6 + $0x2]] %s2128_s22  ;;  %s1492_s6 = smov 256  }
  0x27   : > { %157 = sst [smem:[#allocation6 + $0x1]] %s1491_s5  ;;  %s1493_s15 = smov 16  }
  0x28   : > { %161 = sst [smem:[#allocation6 + $0x3]] %s1492_s6  ;;  %s1494_s19 = smov [#allocation5]  }
  0x29   : > { %s1369_s12 = sshll.u32 %s140_s2, 26  ;;  %163 = sst [smem:[#allocation6 + $0x4]] %s1492_s6 }
  0x2a   : > { %s1370_s14 = sadd.s32 134217728, %s1369_s12  ;;  %165 = sst [smem:[#allocation6 + $0x5]] %s1493_s15 }
  0x2b   : > { %167 = dma.general (%p1364_p12), %s133_s30, %s1379_s23, %s149_s3, %s112_s25, %s1494_s19, [#allocation6], %s1370_s14, 0  }
  0x2c PF: > { %p1372_p13 = scmp.ge.s32.totalorder %s1488_s11, 1  ;;  %p169_p0 = scmp.lt.s32.totalorder %s1488_s11, 3 }
  0x2e   : > { %p170_p1 = pnand %p1372_p13, %p169_p0 }
  0x2f   : > { %s175_s20 = sand.u32 (!%p170_p1), 1, %s1472_s7  }
  0x30   : > { %173 = sbr.rel (%p170_p1) target bundleno = 448 (0x1c0), region = 24  ;;  %s1566_s21 = sshll.u32 (!%p170_p1), %s175_s20, 10 }
  0x31   : > { %s176_s22 = scalar_lea.sflag (!%p170_p1), [#allocation3], %s175_s20  ;;  %s1569_s24 = scalar_lea.vmem (!%p170_p1), [#allocation2], %s1566_s21 }
  0x37   : > { %1463 = dma.done.wait (%p1544_p8), %s176_s22, 16384  }
  0x38   : > { %1465 = vsyncadd (%p1544_p8), %s176_s22, 4294950912  ;;  %v208_v0 = vld [vmem:[%s1569_s24 + $0x8] sm:$0xff]  ;;  %v207_v1 = vld [vmem:[%s1569_s24] sm:$0xff]  ;;  %s1642_s16 = scalar_lea.vmem [#allocation4], %s1566_s21  ;;  %s1376_s23 = sshll.u32 (%p1551_p9), %s1480_s9, 3 }
  0x39   : > { %367 = vxpose.xlu1.b32.start [1/16] %v208_v0, 128  ;;  %335 = vxpose.xlu0.b32.start [1/16] %v207_v1, 128  ;;  %v210_v2 = vld [vmem:[%s1569_s24 + $0x18] sm:$0xff]  ;;  %v209_v3 = vld [vmem:[%s1569_s24 + $0x10] sm:$0xff]  ;;  %v212_v4 = vld [vmem:[%s1569_s24 + $0x28] sm:$0xff]  ;;  %s1843_s27 = scalar_lea.vmem (%p1551_p9), %s2117_s1, %s1376_s23 }
  0x3a   : > { %v211_v5 = vld [vmem:[%s1569_s24 + $0x20] sm:$0xff]  ;;  %v214_v6 = vld [vmem:[%s1569_s24 + $0x38] sm:$0xff]  ;;  %v213_v7 = vld [vmem:[%s1569_s24 + $0x30] sm:$0xff] }
  0x3b   : > { %v216_v8 = vld [vmem:[%s1569_s24 + $0x48] sm:$0xff]  ;;  %v215_v9 = vld [vmem:[%s1569_s24 + $0x40] sm:$0xff]  ;;  %v218_v10 = vld [vmem:[%s1569_s24 + $0x58] sm:$0xff] }
  0x3c   : > { %v217_v11 = vld [vmem:[%s1569_s24 + $0x50] sm:$0xff]  ;;  %v220_v12 = vld [vmem:[%s1569_s24 + $0x68] sm:$0xff]  ;;  %v219_v13 = vld [vmem:[%s1569_s24 + $0x60] sm:$0xff] }
  0x3d   : > { %368 = vxpose.xlu1.b32.cont [2/16] %v210_v2, 128  ;;  %336 = vxpose.xlu0.b32.cont [2/16] %v209_v3, 128  ;;  %v222_v14 = vld [vmem:[%s1569_s24 + $0x78] sm:$0xff]  ;;  %v221_v15 = vld [vmem:[%s1569_s24 + $0x70] sm:$0xff]  ;;  %v224_v16 = vld [vmem:[%s1569_s24 + $0x88] sm:$0xff] }
  0x3e   : > { %v223_v17 = vld [vmem:[%s1569_s24 + $0x80] sm:$0xff]  ;;  %v226_v18 = vld [vmem:[%s1569_s24 + $0x98] sm:$0xff]  ;;  %v225_v19 = vld [vmem:[%s1569_s24 + $0x90] sm:$0xff] }
  0x3f   : > { %v228_v20 = vld [vmem:[%s1569_s24 + $0xa8] sm:$0xff]  ;;  %v227_v21 = vld [vmem:[%s1569_s24 + $0xa0] sm:$0xff]  ;;  %v230_v22 = vld [vmem:[%s1569_s24 + $0xb8] sm:$0xff] }
  0x40   : > { %v229_v23 = vld [vmem:[%s1569_s24 + $0xb0] sm:$0xff]  ;;  %v232_v24 = vld [vmem:[%s1569_s24 + $0xc8] sm:$0xff]  ;;  %v231_v25 = vld [vmem:[%s1569_s24 + $0xc0] sm:$0xff] }
  0x41   : > { %369 = vxpose.xlu1.b32.cont [3/16] %v212_v4, 128  ;;  %337 = vxpose.xlu0.b32.cont [3/16] %v211_v5, 128  ;;  %v234_v26 = vld [vmem:[%s1569_s24 + $0xd8] sm:$0xff]  ;;  %v233_v27 = vld [vmem:[%s1569_s24 + $0xd0] sm:$0xff]  ;;  %v236_v28 = vld [vmem:[%s1569_s24 + $0xe8] sm:$0xff] }
  0x42   : > { %v235_v29 = vld [vmem:[%s1569_s24 + $0xe0] sm:$0xff]  ;;  %v238_v30 = vld [vmem:[%s1569_s24 + $0xf8] sm:$0xff]  ;;  %v237_v31 = vld [vmem:[%s1569_s24 + $0xf0] sm:$0xff] }
  0x43   : > { %v240_v32 = vld [vmem:[%s1569_s24 + $0x108] sm:$0xff]  ;;  %v239_v33 = vld [vmem:[%s1569_s24 + $0x100] sm:$0xff]  ;;  %v242_v34 = vld [vmem:[%s1569_s24 + $0x118] sm:$0xff] }
  0x44   : > { %v241_v35 = vld [vmem:[%s1569_s24 + $0x110] sm:$0xff]  ;;  %v244_v36 = vld [vmem:[%s1569_s24 + $0x128] sm:$0xff]  ;;  %v243_v37 = vld [vmem:[%s1569_s24 + $0x120] sm:$0xff] }
  0x45   : > { %370 = vxpose.xlu1.b32.cont [4/16] %v214_v6, 128  ;;  %338 = vxpose.xlu0.b32.cont [4/16] %v213_v7, 128  ;;  %v246_v38 = vld [vmem:[%s1569_s24 + $0x138] sm:$0xff]  ;;  %v245_v39 = vld [vmem:[%s1569_s24 + $0x130] sm:$0xff]  ;;  %v248_v40 = vld [vmem:[%s1569_s24 + $0x148] sm:$0xff] }
  0x46   : > { %v247_v41 = vld [vmem:[%s1569_s24 + $0x140] sm:$0xff]  ;;  %v250_v42 = vld [vmem:[%s1569_s24 + $0x158] sm:$0xff]  ;;  %v249_v43 = vld [vmem:[%s1569_s24 + $0x150] sm:$0xff] }
  0x47   : > { %v252_v44 = vld [vmem:[%s1569_s24 + $0x168] sm:$0xff]  ;;  %v251_v45 = vld [vmem:[%s1569_s24 + $0x160] sm:$0xff]  ;;  %v254_v46 = vld [vmem:[%s1569_s24 + $0x178] sm:$0xff] }
  0x48   : > { %v253_v47 = vld [vmem:[%s1569_s24 + $0x170] sm:$0xff]  ;;  %v256_v48 = vld [vmem:[%s1569_s24 + $0x188] sm:$0xff]  ;;  %v255_v49 = vld [vmem:[%s1569_s24 + $0x180] sm:$0xff] }
  0x49   : > { %371 = vxpose.xlu1.b32.cont [5/16] %v216_v8, 128  ;;  %339 = vxpose.xlu0.b32.cont [5/16] %v215_v9, 128  ;;  %v258_v50 = vld [vmem:[%s1569_s24 + $0x198] sm:$0xff]  ;;  %v257_v51 = vld [vmem:[%s1569_s24 + $0x190] sm:$0xff]  ;;  %v260_v52 = vld [vmem:[%s1569_s24 + $0x1a8] sm:$0xff] }
  0x4a   : > { %v259_v53 = vld [vmem:[%s1569_s24 + $0x1a0] sm:$0xff]  ;;  %v262_v54 = vld [vmem:[%s1569_s24 + $0x1b8] sm:$0xff]  ;;  %v261_v55 = vld [vmem:[%s1569_s24 + $0x1b0] sm:$0xff] }
  0x4b   : > { %v264_v56 = vld [vmem:[%s1569_s24 + $0x1c8] sm:$0xff]  ;;  %v263_v57 = vld [vmem:[%s1569_s24 + $0x1c0] sm:$0xff]  ;;  %v266_v58 = vld [vmem:[%s1569_s24 + $0x1d8] sm:$0xff] }
  0x4c   : > { %v265_v59 = vld [vmem:[%s1569_s24 + $0x1d0] sm:$0xff]  ;;  %v268_v60 = vld [vmem:[%s1569_s24 + $0x1e8] sm:$0xff]  ;;  %v267_v61 = vld [vmem:[%s1569_s24 + $0x1e0] sm:$0xff] }
  0x4d   : > { %372 = vxpose.xlu1.b32.cont [6/16] %v218_v10, 128  ;;  %340 = vxpose.xlu0.b32.cont [6/16] %v217_v11, 128  ;;  %v270_v62 = vld [vmem:[%s1569_s24 + $0x1f8] sm:$0xff]  ;;  %v269_v63 = vld [vmem:[%s1569_s24 + $0x1f0] sm:$0xff]  ;;  %v272_v0 = vld [vmem:[%s1569_s24 + $0x208] sm:$0xff] }
  0x4e   : > { %v271_v1 = vld [vmem:[%s1569_s24 + $0x200] sm:$0xff]  ;;  %v274_v4 = vld [vmem:[%s1569_s24 + $0x218] sm:$0xff]  ;;  %v273_v5 = vld [vmem:[%s1569_s24 + $0x210] sm:$0xff] }
  0x4f   : > { %v276_v8 = vld [vmem:[%s1569_s24 + $0x228] sm:$0xff]  ;;  %v275_v9 = vld [vmem:[%s1569_s24 + $0x220] sm:$0xff] }
  0x51   : > { %373 = vxpose.xlu1.b32.cont [7/16] %v220_v12, 128  ;;  %341 = vxpose.xlu0.b32.cont [7/16] %v219_v13, 128  ;;  %v278_v12 = vld [vmem:[%s1569_s24 + $0x238] sm:$0xff]  ;;  %v277_v13 = vld [vmem:[%s1569_s24 + $0x230] sm:$0xff] }
  0x55   : > { %374 = vxpose.xlu1.b32.cont [8/16] %v222_v14, 128  ;;  %342 = vxpose.xlu0.b32.cont [8/16] %v221_v15, 128 }
  0x59   : > { %375 = vxpose.xlu1.b32.cont [9/16] %v224_v16, 128  ;;  %343 = vxpose.xlu0.b32.cont [9/16] %v223_v17, 128  ;;  %v280_v16 = vld [vmem:[%s1569_s24 + $0x248] sm:$0xff]  ;;  %v279_v17 = vld [vmem:[%s1569_s24 + $0x240] sm:$0xff] }
  0x5d   : > { %376 = vxpose.xlu1.b32.cont [10/16] %v226_v18, 128  ;;  %344 = vxpose.xlu0.b32.cont [10/16] %v225_v19, 128 }
  0x61   : > { %377 = vxpose.xlu1.b32.cont [11/16] %v228_v20, 128  ;;  %345 = vxpose.xlu0.b32.cont [11/16] %v227_v21, 128  ;;  %v282_v20 = vld [vmem:[%s1569_s24 + $0x258] sm:$0xff]  ;;  %v281_v21 = vld [vmem:[%s1569_s24 + $0x250] sm:$0xff] }
  0x65   : > { %378 = vxpose.xlu1.b32.cont [12/16] %v230_v22, 128  ;;  %346 = vxpose.xlu0.b32.cont [12/16] %v229_v23, 128 }
  0x69   : > { %379 = vxpose.xlu1.b32.cont [13/16] %v232_v24, 128  ;;  %347 = vxpose.xlu0.b32.cont [13/16] %v231_v25, 128  ;;  %v284_v24 = vld [vmem:[%s1569_s24 + $0x268] sm:$0xff]  ;;  %v283_v25 = vld [vmem:[%s1569_s24 + $0x260] sm:$0xff] }
  0x6d   : > { %380 = vxpose.xlu1.b32.cont [14/16] %v234_v26, 128  ;;  %348 = vxpose.xlu0.b32.cont [14/16] %v233_v27, 128 }
  0x71   : > { %381 = vxpose.xlu1.b32.cont [15/16] %v236_v28, 128  ;;  %349 = vxpose.xlu0.b32.cont [15/16] %v235_v29, 128  ;;  %v286_v28 = vld [vmem:[%s1569_s24 + $0x278] sm:$0xff]  ;;  %v285_v29 = vld [vmem:[%s1569_s24 + $0x270] sm:$0xff] }
  0x75   : > { %382 = vxpose.xlu1.b32.end [16/16] %v238_v30, 128  ;;  %350 = vxpose.xlu0.b32.end [16/16] %v237_v31, 128 }
  0x79   : > { %431 = vxpose.xlu1.b32.start [1/16] %v240_v32, 128  ;;  %399 = vxpose.xlu0.b32.start [1/16] %v239_v33, 128  ;;  %v288_v32 = vld [vmem:[%s1569_s24 + $0x288] sm:$0xff]  ;;  %v287_v33 = vld [vmem:[%s1569_s24 + $0x280] sm:$0xff] }
  0x7d   : > { %432 = vxpose.xlu1.b32.cont [2/16] %v242_v34, 128  ;;  %400 = vxpose.xlu0.b32.cont [2/16] %v241_v35, 128 }
  0x81   : > { %433 = vxpose.xlu1.b32.cont [3/16] %v244_v36, 128  ;;  %401 = vxpose.xlu0.b32.cont [3/16] %v243_v37, 128  ;;  %v290_v36 = vld [vmem:[%s1569_s24 + $0x298] sm:$0xff]  ;;  %v289_v37 = vld [vmem:[%s1569_s24 + $0x290] sm:$0xff] }
  0x85   : > { %434 = vxpose.xlu1.b32.cont [4/16] %v246_v38, 128  ;;  %402 = vxpose.xlu0.b32.cont [4/16] %v245_v39, 128 }
  0x89   : > { %435 = vxpose.xlu1.b32.cont [5/16] %v248_v40, 128  ;;  %403 = vxpose.xlu0.b32.cont [5/16] %v247_v41, 128  ;;  %v292_v40 = vld [vmem:[%s1569_s24 + $0x2a8] sm:$0xff]  ;;  %v291_v41 = vld [vmem:[%s1569_s24 + $0x2a0] sm:$0xff] }
  0x8d   : > { %436 = vxpose.xlu1.b32.cont [6/16] %v250_v42, 128  ;;  %404 = vxpose.xlu0.b32.cont [6/16] %v249_v43, 128 }
  0x91   : > { %437 = vxpose.xlu1.b32.cont [7/16] %v252_v44, 128  ;;  %405 = vxpose.xlu0.b32.cont [7/16] %v251_v45, 128  ;;  %v294_v44 = vld [vmem:[%s1569_s24 + $0x2b8] sm:$0xff]  ;;  %v293_v45 = vld [vmem:[%s1569_s24 + $0x2b0] sm:$0xff] }
  0x95   : > { %438 = vxpose.xlu1.b32.cont [8/16] %v254_v46, 128  ;;  %406 = vxpose.xlu0.b32.cont [8/16] %v253_v47, 128 }
  0x99   : > { %439 = vxpose.xlu1.b32.cont [9/16] %v256_v48, 128  ;;  %407 = vxpose.xlu0.b32.cont [9/16] %v255_v49, 128  ;;  %v296_v48 = vld [vmem:[%s1569_s24 + $0x2c8] sm:$0xff]  ;;  %v295_v49 = vld [vmem:[%s1569_s24 + $0x2c0] sm:$0xff] }
  0x9d   : > { %440 = vxpose.xlu1.b32.cont [10/16] %v258_v50, 128  ;;  %408 = vxpose.xlu0.b32.cont [10/16] %v257_v51, 128 }
  0xa1   : > { %441 = vxpose.xlu1.b32.cont [11/16] %v260_v52, 128  ;;  %409 = vxpose.xlu0.b32.cont [11/16] %v259_v53, 128  ;;  %v298_v52 = vld [vmem:[%s1569_s24 + $0x2d8] sm:$0xff]  ;;  %v297_v53 = vld [vmem:[%s1569_s24 + $0x2d0] sm:$0xff] }
  0xa5   : > { %442 = vxpose.xlu1.b32.cont [12/16] %v262_v54, 128  ;;  %410 = vxpose.xlu0.b32.cont [12/16] %v261_v55, 128 }
  0xa9   : > { %443 = vxpose.xlu1.b32.cont [13/16] %v264_v56, 128  ;;  %411 = vxpose.xlu0.b32.cont [13/16] %v263_v57, 128  ;;  %v300_v56 = vld [vmem:[%s1569_s24 + $0x2e8] sm:$0xff]  ;;  %v299_v57 = vld [vmem:[%s1569_s24 + $0x2e0] sm:$0xff] }
  0xad   : > { %444 = vxpose.xlu1.b32.cont [14/16] %v266_v58, 128  ;;  %412 = vxpose.xlu0.b32.cont [14/16] %v265_v59, 128 }
  0xb1   : > { %445 = vxpose.xlu1.b32.cont [15/16] %v268_v60, 128  ;;  %413 = vxpose.xlu0.b32.cont [15/16] %v267_v61, 128  ;;  %v302_v60 = vld [vmem:[%s1569_s24 + $0x2f8] sm:$0xff]  ;;  %v301_v61 = vld [vmem:[%s1569_s24 + $0x2f0] sm:$0xff] }
  0xb5   : > { %446 = vxpose.xlu1.b32.end [16/16] %v270_v62, 128  ;;  %414 = vxpose.xlu0.b32.end [16/16] %v269_v63, 128 }
  0xb9   : > { %495 = vxpose.xlu1.b32.start [1/16] %v272_v0, 128  ;;  %v383_v2 = vpop.trf.xlu1  ;;  %463 = vxpose.xlu0.b32.start [1/16] %v271_v1, 128  ;;  %v351_v3 = vpop.trf.xlu0  ;;  %v304_v0 = vld [vmem:[%s1569_s24 + $0x308] sm:$0xff]  ;;  %v303_v1 = vld [vmem:[%s1569_s24 + $0x300] sm:$0xff] }
  0xba   : > { %607 = vst [vmem:[%s1642_s16 + $0x80] sm:$0xff] %v383_v2  ;;  %591 = vst [vmem:[%s1642_s16] sm:$0xff] %v351_v3 }
  0xbd   : > { %496 = vxpose.xlu1.b32.cont [2/16] %v274_v4, 128  ;;  %v384_v6 = vpop.trf.xlu1  ;;  %464 = vxpose.xlu0.b32.cont [2/16] %v273_v5, 128  ;;  %v352_v7 = vpop.trf.xlu0  ;;  %v306_v4 = vld [vmem:[%s1569_s24 + $0x318] sm:$0xff]  ;;  %v305_v5 = vld [vmem:[%s1569_s24 + $0x310] sm:$0xff] }
  0xbe   : > { %608 = vst [vmem:[%s1642_s16 + $0x88] sm:$0xff] %v384_v6  ;;  %592 = vst [vmem:[%s1642_s16 + $0x8] sm:$0xff] %v352_v7 }
  0xc1   : > { %497 = vxpose.xlu1.b32.cont [3/16] %v276_v8, 128  ;;  %v385_v10 = vpop.trf.xlu1  ;;  %465 = vxpose.xlu0.b32.cont [3/16] %v275_v9, 128  ;;  %v353_v11 = vpop.trf.xlu0  ;;  %v308_v8 = vld [vmem:[%s1569_s24 + $0x328] sm:$0xff]  ;;  %v307_v9 = vld [vmem:[%s1569_s24 + $0x320] sm:$0xff] }
  0xc2   : > { %609 = vst [vmem:[%s1642_s16 + $0x90] sm:$0xff] %v385_v10  ;;  %593 = vst [vmem:[%s1642_s16 + $0x10] sm:$0xff] %v353_v11 }
  0xc5   : > { %498 = vxpose.xlu1.b32.cont [4/16] %v278_v12, 128  ;;  %v386_v14 = vpop.trf.xlu1  ;;  %466 = vxpose.xlu0.b32.cont [4/16] %v277_v13, 128  ;;  %v354_v15 = vpop.trf.xlu0  ;;  %v310_v12 = vld [vmem:[%s1569_s24 + $0x338] sm:$0xff]  ;;  %v309_v13 = vld [vmem:[%s1569_s24 + $0x330] sm:$0xff] }
  0xc6   : > { %610 = vst [vmem:[%s1642_s16 + $0x98] sm:$0xff] %v386_v14  ;;  %594 = vst [vmem:[%s1642_s16 + $0x18] sm:$0xff] %v354_v15 }
  0xc9   : > { %499 = vxpose.xlu1.b32.cont [5/16] %v280_v16, 128  ;;  %v387_v18 = vpop.trf.xlu1  ;;  %467 = vxpose.xlu0.b32.cont [5/16] %v279_v17, 128  ;;  %v355_v19 = vpop.trf.xlu0  ;;  %v312_v16 = vld [vmem:[%s1569_s24 + $0x348] sm:$0xff]  ;;  %v311_v17 = vld [vmem:[%s1569_s24 + $0x340] sm:$0xff] }
  0xca   : > { %611 = vst [vmem:[%s1642_s16 + $0xa0] sm:$0xff] %v387_v18  ;;  %595 = vst [vmem:[%s1642_s16 + $0x20] sm:$0xff] %v355_v19 }
  0xcd   : > { %500 = vxpose.xlu1.b32.cont [6/16] %v282_v20, 128  ;;  %v388_v22 = vpop.trf.xlu1  ;;  %468 = vxpose.xlu0.b32.cont [6/16] %v281_v21, 128  ;;  %v356_v23 = vpop.trf.xlu0  ;;  %v314_v20 = vld [vmem:[%s1569_s24 + $0x358] sm:$0xff]  ;;  %v313_v21 = vld [vmem:[%s1569_s24 + $0x350] sm:$0xff] }
  0xce   : > { %612 = vst [vmem:[%s1642_s16 + $0xa8] sm:$0xff] %v388_v22  ;;  %596 = vst [vmem:[%s1642_s16 + $0x28] sm:$0xff] %v356_v23 }
  0xd1   : > { %501 = vxpose.xlu1.b32.cont [7/16] %v284_v24, 128  ;;  %v389_v26 = vpop.trf.xlu1  ;;  %469 = vxpose.xlu0.b32.cont [7/16] %v283_v25, 128  ;;  %v357_v27 = vpop.trf.xlu0  ;;  %v316_v24 = vld [vmem:[%s1569_s24 + $0x368] sm:$0xff]  ;;  %v315_v25 = vld [vmem:[%s1569_s24 + $0x360] sm:$0xff] }
  0xd2   : > { %613 = vst [vmem:[%s1642_s16 + $0xb0] sm:$0xff] %v389_v26  ;;  %597 = vst [vmem:[%s1642_s16 + $0x30] sm:$0xff] %v357_v27 }
  0xd5   : > { %502 = vxpose.xlu1.b32.cont [8/16] %v286_v28, 128  ;;  %v390_v30 = vpop.trf.xlu1  ;;  %470 = vxpose.xlu0.b32.cont [8/16] %v285_v29, 128  ;;  %v358_v31 = vpop.trf.xlu0  ;;  %v318_v28 = vld [vmem:[%s1569_s24 + $0x378] sm:$0xff]  ;;  %v317_v29 = vld [vmem:[%s1569_s24 + $0x370] sm:$0xff] }
  0xd6   : > { %614 = vst [vmem:[%s1642_s16 + $0xb8] sm:$0xff] %v390_v30  ;;  %598 = vst [vmem:[%s1642_s16 + $0x38] sm:$0xff] %v358_v31 }
  0xd9   : > { %503 = vxpose.xlu1.b32.cont [9/16] %v288_v32, 128  ;;  %v391_v34 = vpop.trf.xlu1  ;;  %471 = vxpose.xlu0.b32.cont [9/16] %v287_v33, 128  ;;  %v359_v35 = vpop.trf.xlu0  ;;  %v320_v32 = vld [vmem:[%s1569_s24 + $0x388] sm:$0xff]  ;;  %v319_v33 = vld [vmem:[%s1569_s24 + $0x380] sm:$0xff] }
  0xda   : > { %615 = vst [vmem:[%s1642_s16 + $0xc0] sm:$0xff] %v391_v34  ;;  %599 = vst [vmem:[%s1642_s16 + $0x40] sm:$0xff] %v359_v35 }
  0xdd   : > { %504 = vxpose.xlu1.b32.cont [10/16] %v290_v36, 128  ;;  %v392_v38 = vpop.trf.xlu1  ;;  %472 = vxpose.xlu0.b32.cont [10/16] %v289_v37, 128  ;;  %v360_v39 = vpop.trf.xlu0  ;;  %v322_v36 = vld [vmem:[%s1569_s24 + $0x398] sm:$0xff]  ;;  %v321_v37 = vld [vmem:[%s1569_s24 + $0x390] sm:$0xff] }
  0xde   : > { %616 = vst [vmem:[%s1642_s16 + $0xc8] sm:$0xff] %v392_v38  ;;  %600 = vst [vmem:[%s1642_s16 + $0x48] sm:$0xff] %v360_v39 }
  0xe1   : > { %505 = vxpose.xlu1.b32.cont [11/16] %v292_v40, 128  ;;  %v393_v42 = vpop.trf.xlu1  ;;  %473 = vxpose.xlu0.b32.cont [11/16] %v291_v41, 128  ;;  %v361_v43 = vpop.trf.xlu0  ;;  %v324_v40 = vld [vmem:[%s1569_s24 + $0x3a8] sm:$0xff]  ;;  %v323_v41 = vld [vmem:[%s1569_s24 + $0x3a0] sm:$0xff] }
  0xe2   : > { %617 = vst [vmem:[%s1642_s16 + $0xd0] sm:$0xff] %v393_v42  ;;  %601 = vst [vmem:[%s1642_s16 + $0x50] sm:$0xff] %v361_v43 }
  0xe5   : > { %506 = vxpose.xlu1.b32.cont [12/16] %v294_v44, 128  ;;  %v394_v46 = vpop.trf.xlu1  ;;  %474 = vxpose.xlu0.b32.cont [12/16] %v293_v45, 128  ;;  %v362_v47 = vpop.trf.xlu0  ;;  %v326_v44 = vld [vmem:[%s1569_s24 + $0x3b8] sm:$0xff]  ;;  %v325_v45 = vld [vmem:[%s1569_s24 + $0x3b0] sm:$0xff] }
  0xe6   : > { %618 = vst [vmem:[%s1642_s16 + $0xd8] sm:$0xff] %v394_v46  ;;  %602 = vst [vmem:[%s1642_s16 + $0x58] sm:$0xff] %v362_v47 }
  0xe9   : > { %507 = vxpose.xlu1.b32.cont [13/16] %v296_v48, 128  ;;  %v395_v50 = vpop.trf.xlu1  ;;  %475 = vxpose.xlu0.b32.cont [13/16] %v295_v49, 128  ;;  %v363_v51 = vpop.trf.xlu0  ;;  %v328_v48 = vld [vmem:[%s1569_s24 + $0x3c8] sm:$0xff]  ;;  %v327_v49 = vld [vmem:[%s1569_s24 + $0x3c0] sm:$0xff] }
  0xea   : > { %619 = vst [vmem:[%s1642_s16 + $0xe0] sm:$0xff] %v395_v50  ;;  %603 = vst [vmem:[%s1642_s16 + $0x60] sm:$0xff] %v363_v51 }
  0xed   : > { %508 = vxpose.xlu1.b32.cont [14/16] %v298_v52, 128  ;;  %v396_v54 = vpop.trf.xlu1  ;;  %476 = vxpose.xlu0.b32.cont [14/16] %v297_v53, 128  ;;  %v364_v55 = vpop.trf.xlu0  ;;  %v330_v52 = vld [vmem:[%s1569_s24 + $0x3d8] sm:$0xff]  ;;  %v329_v53 = vld [vmem:[%s1569_s24 + $0x3d0] sm:$0xff] }
  0xee   : > { %620 = vst [vmem:[%s1642_s16 + $0xe8] sm:$0xff] %v396_v54  ;;  %604 = vst [vmem:[%s1642_s16 + $0x68] sm:$0xff] %v364_v55 }
  0xf1   : > { %509 = vxpose.xlu1.b32.cont [15/16] %v300_v56, 128  ;;  %v397_v58 = vpop.trf.xlu1  ;;  %477 = vxpose.xlu0.b32.cont [15/16] %v299_v57, 128  ;;  %v365_v59 = vpop.trf.xlu0  ;;  %v332_v56 = vld [vmem:[%s1569_s24 + $0x3e8] sm:$0xff]  ;;  %v331_v57 = vld [vmem:[%s1569_s24 + $0x3e0] sm:$0xff] }
  0xf2   : > { %621 = vst [vmem:[%s1642_s16 + $0xf0] sm:$0xff] %v397_v58  ;;  %605 = vst [vmem:[%s1642_s16 + $0x70] sm:$0xff] %v365_v59 }
  0xf5   : > { %510 = vxpose.xlu1.b32.end [16/16] %v302_v60, 128  ;;  %v398_v62 = vpop.trf.xlu1  ;;  %478 = vxpose.xlu0.b32.end [16/16] %v301_v61, 128  ;;  %v366_v63 = vpop.trf.xlu0  ;;  %v334_v60 = vld [vmem:[%s1569_s24 + $0x3f8] sm:$0xff]  ;;  %v333_v61 = vld [vmem:[%s1569_s24 + $0x3f0] sm:$0xff] }
  0xf6   : > { %622 = vst [vmem:[%s1642_s16 + $0xf8] sm:$0xff] %v398_v62  ;;  %606 = vst [vmem:[%s1642_s16 + $0x78] sm:$0xff] %v366_v63 }
  0xf9   : > { %559 = vxpose.xlu1.b32.start [1/16] %v304_v0, 128  ;;  %v447_v2 = vpop.trf.xlu1  ;;  %527 = vxpose.xlu0.b32.start [1/16] %v303_v1, 128  ;;  %v415_v3 = vpop.trf.xlu0 }
  0xfa   : > { %639 = vst [vmem:[%s1642_s16 + $0x180] sm:$0xff] %v447_v2  ;;  %623 = vst [vmem:[%s1642_s16 + $0x100] sm:$0xff] %v415_v3 }
  0xfd   : > { %560 = vxpose.xlu1.b32.cont [2/16] %v306_v4, 128  ;;  %v448_v6 = vpop.trf.xlu1  ;;  %528 = vxpose.xlu0.b32.cont [2/16] %v305_v5, 128  ;;  %v416_v7 = vpop.trf.xlu0 }
  0xfe   : > { %640 = vst [vmem:[%s1642_s16 + $0x188] sm:$0xff] %v448_v6  ;;  %624 = vst [vmem:[%s1642_s16 + $0x108] sm:$0xff] %v416_v7 }
 0x101   : > { %561 = vxpose.xlu1.b32.cont [3/16] %v308_v8, 128  ;;  %v449_v10 = vpop.trf.xlu1  ;;  %529 = vxpose.xlu0.b32.cont [3/16] %v307_v9, 128  ;;  %v417_v11 = vpop.trf.xlu0 }
 0x102   : > { %641 = vst [vmem:[%s1642_s16 + $0x190] sm:$0xff] %v449_v10  ;;  %625 = vst [vmem:[%s1642_s16 + $0x110] sm:$0xff] %v417_v11 }
 0x105   : > { %562 = vxpose.xlu1.b32.cont [4/16] %v310_v12, 128  ;;  %v450_v14 = vpop.trf.xlu1  ;;  %530 = vxpose.xlu0.b32.cont [4/16] %v309_v13, 128  ;;  %v418_v15 = vpop.trf.xlu0 }
 0x106   : > { %642 = vst [vmem:[%s1642_s16 + $0x198] sm:$0xff] %v450_v14  ;;  %626 = vst [vmem:[%s1642_s16 + $0x118] sm:$0xff] %v418_v15 }
 0x109   : > { %563 = vxpose.xlu1.b32.cont [5/16] %v312_v16, 128  ;;  %v451_v18 = vpop.trf.xlu1  ;;  %531 = vxpose.xlu0.b32.cont [5/16] %v311_v17, 128  ;;  %v419_v19 = vpop.trf.xlu0 }
 0x10a   : > { %643 = vst [vmem:[%s1642_s16 + $0x1a0] sm:$0xff] %v451_v18  ;;  %627 = vst [vmem:[%s1642_s16 + $0x120] sm:$0xff] %v419_v19 }
 0x10d   : > { %564 = vxpose.xlu1.b32.cont [6/16] %v314_v20, 128  ;;  %v452_v22 = vpop.trf.xlu1  ;;  %532 = vxpose.xlu0.b32.cont [6/16] %v313_v21, 128  ;;  %v420_v23 = vpop.trf.xlu0 }
 0x10e   : > { %644 = vst [vmem:[%s1642_s16 + $0x1a8] sm:$0xff] %v452_v22  ;;  %628 = vst [vmem:[%s1642_s16 + $0x128] sm:$0xff] %v420_v23 }
 0x111   : > { %565 = vxpose.xlu1.b32.cont [7/16] %v316_v24, 128  ;;  %v453_v26 = vpop.trf.xlu1  ;;  %533 = vxpose.xlu0.b32.cont [7/16] %v315_v25, 128  ;;  %v421_v27 = vpop.trf.xlu0 }
 0x112   : > { %645 = vst [vmem:[%s1642_s16 + $0x1b0] sm:$0xff] %v453_v26  ;;  %629 = vst [vmem:[%s1642_s16 + $0x130] sm:$0xff] %v421_v27 }
 0x115   : > { %566 = vxpose.xlu1.b32.cont [8/16] %v318_v28, 128  ;;  %v454_v30 = vpop.trf.xlu1  ;;  %534 = vxpose.xlu0.b32.cont [8/16] %v317_v29, 128  ;;  %v422_v31 = vpop.trf.xlu0 }
 0x116   : > { %646 = vst [vmem:[%s1642_s16 + $0x1b8] sm:$0xff] %v454_v30  ;;  %630 = vst [vmem:[%s1642_s16 + $0x138] sm:$0xff] %v422_v31 }
 0x119   : > { %567 = vxpose.xlu1.b32.cont [9/16] %v320_v32, 128  ;;  %v455_v34 = vpop.trf.xlu1  ;;  %535 = vxpose.xlu0.b32.cont [9/16] %v319_v33, 128  ;;  %v423_v35 = vpop.trf.xlu0 }
 0x11a   : > { %647 = vst [vmem:[%s1642_s16 + $0x1c0] sm:$0xff] %v455_v34  ;;  %631 = vst [vmem:[%s1642_s16 + $0x140] sm:$0xff] %v423_v35 }
 0x11d   : > { %568 = vxpose.xlu1.b32.cont [10/16] %v322_v36, 128  ;;  %v456_v38 = vpop.trf.xlu1  ;;  %536 = vxpose.xlu0.b32.cont [10/16] %v321_v37, 128  ;;  %v424_v39 = vpop.trf.xlu0 }
 0x11e   : > { %648 = vst [vmem:[%s1642_s16 + $0x1c8] sm:$0xff] %v456_v38  ;;  %632 = vst [vmem:[%s1642_s16 + $0x148] sm:$0xff] %v424_v39 }
 0x121   : > { %569 = vxpose.xlu1.b32.cont [11/16] %v324_v40, 128  ;;  %v457_v42 = vpop.trf.xlu1  ;;  %537 = vxpose.xlu0.b32.cont [11/16] %v323_v41, 128  ;;  %v425_v43 = vpop.trf.xlu0 }
 0x122   : > { %649 = vst [vmem:[%s1642_s16 + $0x1d0] sm:$0xff] %v457_v42  ;;  %633 = vst [vmem:[%s1642_s16 + $0x150] sm:$0xff] %v425_v43 }
 0x125   : > { %570 = vxpose.xlu1.b32.cont [12/16] %v326_v44, 128  ;;  %v458_v46 = vpop.trf.xlu1  ;;  %538 = vxpose.xlu0.b32.cont [12/16] %v325_v45, 128  ;;  %v426_v47 = vpop.trf.xlu0 }
 0x126   : > { %650 = vst [vmem:[%s1642_s16 + $0x1d8] sm:$0xff] %v458_v46  ;;  %634 = vst [vmem:[%s1642_s16 + $0x158] sm:$0xff] %v426_v47 }
 0x129   : > { %571 = vxpose.xlu1.b32.cont [13/16] %v328_v48, 128  ;;  %v459_v50 = vpop.trf.xlu1  ;;  %539 = vxpose.xlu0.b32.cont [13/16] %v327_v49, 128  ;;  %v427_v51 = vpop.trf.xlu0 }
 0x12a   : > { %651 = vst [vmem:[%s1642_s16 + $0x1e0] sm:$0xff] %v459_v50  ;;  %635 = vst [vmem:[%s1642_s16 + $0x160] sm:$0xff] %v427_v51 }
 0x12d   : > { %572 = vxpose.xlu1.b32.cont [14/16] %v330_v52, 128  ;;  %v460_v54 = vpop.trf.xlu1  ;;  %540 = vxpose.xlu0.b32.cont [14/16] %v329_v53, 128  ;;  %v428_v55 = vpop.trf.xlu0 }
 0x12e   : > { %652 = vst [vmem:[%s1642_s16 + $0x1e8] sm:$0xff] %v460_v54  ;;  %636 = vst [vmem:[%s1642_s16 + $0x168] sm:$0xff] %v428_v55 }
 0x131   : > { %573 = vxpose.xlu1.b32.cont [15/16] %v332_v56, 128  ;;  %v461_v58 = vpop.trf.xlu1  ;;  %541 = vxpose.xlu0.b32.cont [15/16] %v331_v57, 128  ;;  %v429_v59 = vpop.trf.xlu0 }
 0x132   : > { %653 = vst [vmem:[%s1642_s16 + $0x1f0] sm:$0xff] %v461_v58  ;;  %637 = vst [vmem:[%s1642_s16 + $0x170] sm:$0xff] %v429_v59 }
 0x135   : > { %574 = vxpose.xlu1.b32.end [16/16] %v334_v60, 128  ;;  %v462_v62 = vpop.trf.xlu1  ;;  %542 = vxpose.xlu0.b32.end [16/16] %v333_v61, 128  ;;  %v430_v63 = vpop.trf.xlu0 }
 0x136   : > { %654 = vst [vmem:[%s1642_s16 + $0x1f8] sm:$0xff] %v462_v62  ;;  %638 = vst [vmem:[%s1642_s16 + $0x178] sm:$0xff] %v430_v63 }
 0x139   : > { %v511_v0 = vpop.trf.xlu1  ;;  %v479_v1 = vpop.trf.xlu0 }
 0x13a   : > { %671 = vst [vmem:[%s1642_s16 + $0x280] sm:$0xff] %v511_v0  ;;  %655 = vst [vmem:[%s1642_s16 + $0x200] sm:$0xff] %v479_v1  ;;  %v1015_v0 = vld [vmem:[%s1642_s16] sm:$0xff] (%p1551_p9)  ;;  %v1017_v1 = vld [vmem:[%s1642_s16 + $0x8] sm:$0xff] (%p1551_p9) }
 0x13b   : > { %1016 = vst [vmem:[%s1843_s27] sm:$0xff] (%p1551_p9), %v1015_v0  ;;  %1018 = vst [vmem:[%s1843_s27 + $0x10] sm:$0xff] (%p1551_p9), %v1017_v1 }
 0x13d   : > { %v512_v2 = vpop.trf.xlu1  ;;  %v480_v3 = vpop.trf.xlu0 }
 0x13e   : > { %672 = vst [vmem:[%s1642_s16 + $0x288] sm:$0xff] %v512_v2  ;;  %656 = vst [vmem:[%s1642_s16 + $0x208] sm:$0xff] %v480_v3  ;;  %v1019_v2 = vld [vmem:[%s1642_s16 + $0x10] sm:$0xff] (%p1551_p9)  ;;  %v1021_v3 = vld [vmem:[%s1642_s16 + $0x18] sm:$0xff] (%p1551_p9) }
 0x13f   : > { %1020 = vst [vmem:[%s1843_s27 + $0x20] sm:$0xff] (%p1551_p9), %v1019_v2  ;;  %1022 = vst [vmem:[%s1843_s27 + $0x30] sm:$0xff] (%p1551_p9), %v1021_v3 }
 0x141   : > { %v513_v4 = vpop.trf.xlu1  ;;  %v481_v5 = vpop.trf.xlu0  ;;  %v1143_v0 = vld [vmem:[%s1642_s16 + $0x200] sm:$0xff] (%p1551_p9) }
 0x142   : > { %673 = vst [vmem:[%s1642_s16 + $0x290] sm:$0xff] %v513_v4  ;;  %657 = vst [vmem:[%s1642_s16 + $0x210] sm:$0xff] %v481_v5  ;;  %v1023_v4 = vld [vmem:[%s1642_s16 + $0x20] sm:$0xff] (%p1551_p9)  ;;  %v1025_v5 = vld [vmem:[%s1642_s16 + $0x28] sm:$0xff] (%p1551_p9) }
 0x143   : > { %1024 = vst [vmem:[%s1843_s27 + $0x40] sm:$0xff] (%p1551_p9), %v1023_v4  ;;  %1026 = vst [vmem:[%s1843_s27 + $0x50] sm:$0xff] (%p1551_p9), %v1025_v5 }
 0x144   : > { %1144 = vst [vmem:[%s1843_s27 + $0x400] sm:$0xff] (%p1551_p9), %v1143_v0 }
 0x145   : > { %v514_v6 = vpop.trf.xlu1  ;;  %v482_v7 = vpop.trf.xlu0  ;;  %v1145_v1 = vld [vmem:[%s1642_s16 + $0x208] sm:$0xff] (%p1551_p9) }
 0x146   : > { %674 = vst [vmem:[%s1642_s16 + $0x298] sm:$0xff] %v514_v6  ;;  %658 = vst [vmem:[%s1642_s16 + $0x218] sm:$0xff] %v482_v7  ;;  %v1027_v6 = vld [vmem:[%s1642_s16 + $0x30] sm:$0xff] (%p1551_p9)  ;;  %v1029_v7 = vld [vmem:[%s1642_s16 + $0x38] sm:$0xff] (%p1551_p9) }
 0x147   : > { %1028 = vst [vmem:[%s1843_s27 + $0x60] sm:$0xff] (%p1551_p9), %v1027_v6  ;;  %1030 = vst [vmem:[%s1843_s27 + $0x70] sm:$0xff] (%p1551_p9), %v1029_v7 }
 0x148   : > { %1146 = vst [vmem:[%s1843_s27 + $0x410] sm:$0xff] (%p1551_p9), %v1145_v1 }
 0x149   : > { %v515_v8 = vpop.trf.xlu1  ;;  %v483_v9 = vpop.trf.xlu0  ;;  %v1147_v2 = vld [vmem:[%s1642_s16 + $0x210] sm:$0xff] (%p1551_p9) }
 0x14a   : > { %675 = vst [vmem:[%s1642_s16 + $0x2a0] sm:$0xff] %v515_v8  ;;  %659 = vst [vmem:[%s1642_s16 + $0x220] sm:$0xff] %v483_v9  ;;  %v1031_v8 = vld [vmem:[%s1642_s16 + $0x40] sm:$0xff] (%p1551_p9)  ;;  %v1033_v9 = vld [vmem:[%s1642_s16 + $0x48] sm:$0xff] (%p1551_p9) }
 0x14b   : > { %1032 = vst [vmem:[%s1843_s27 + $0x80] sm:$0xff] (%p1551_p9), %v1031_v8  ;;  %1034 = vst [vmem:[%s1843_s27 + $0x90] sm:$0xff] (%p1551_p9), %v1033_v9 }
 0x14c   : > { %1148 = vst [vmem:[%s1843_s27 + $0x420] sm:$0xff] (%p1551_p9), %v1147_v2 }
 0x14d   : > { %v516_v10 = vpop.trf.xlu1  ;;  %v484_v11 = vpop.trf.xlu0  ;;  %v1149_v3 = vld [vmem:[%s1642_s16 + $0x218] sm:$0xff] (%p1551_p9) }
 0x14e   : > { %676 = vst [vmem:[%s1642_s16 + $0x2a8] sm:$0xff] %v516_v10  ;;  %660 = vst [vmem:[%s1642_s16 + $0x228] sm:$0xff] %v484_v11  ;;  %v1035_v10 = vld [vmem:[%s1642_s16 + $0x50] sm:$0xff] (%p1551_p9)  ;;  %v1037_v11 = vld [vmem:[%s1642_s16 + $0x58] sm:$0xff] (%p1551_p9) }
 0x14f   : > { %1036 = vst [vmem:[%s1843_s27 + $0xa0] sm:$0xff] (%p1551_p9), %v1035_v10  ;;  %1038 = vst [vmem:[%s1843_s27 + $0xb0] sm:$0xff] (%p1551_p9), %v1037_v11 }
 0x150   : > { %1150 = vst [vmem:[%s1843_s27 + $0x430] sm:$0xff] (%p1551_p9), %v1149_v3 }
 0x151   : > { %v517_v12 = vpop.trf.xlu1  ;;  %v485_v13 = vpop.trf.xlu0  ;;  %v1151_v4 = vld [vmem:[%s1642_s16 + $0x220] sm:$0xff] (%p1551_p9) }
 0x152   : > { %677 = vst [vmem:[%s1642_s16 + $0x2b0] sm:$0xff] %v517_v12  ;;  %661 = vst [vmem:[%s1642_s16 + $0x230] sm:$0xff] %v485_v13  ;;  %v1039_v12 = vld [vmem:[%s1642_s16 + $0x60] sm:$0xff] (%p1551_p9)  ;;  %v1041_v13 = vld [vmem:[%s1642_s16 + $0x68] sm:$0xff] (%p1551_p9) }
 0x153   : > { %1040 = vst [vmem:[%s1843_s27 + $0xc0] sm:$0xff] (%p1551_p9), %v1039_v12  ;;  %1042 = vst [vmem:[%s1843_s27 + $0xd0] sm:$0xff] (%p1551_p9), %v1041_v13 }
 0x154   : > { %1152 = vst [vmem:[%s1843_s27 + $0x440] sm:$0xff] (%p1551_p9), %v1151_v4 }
 0x155   : > { %v518_v14 = vpop.trf.xlu1  ;;  %v486_v15 = vpop.trf.xlu0  ;;  %v1153_v5 = vld [vmem:[%s1642_s16 + $0x228] sm:$0xff] (%p1551_p9) }
 0x156   : > { %678 = vst [vmem:[%s1642_s16 + $0x2b8] sm:$0xff] %v518_v14  ;;  %662 = vst [vmem:[%s1642_s16 + $0x238] sm:$0xff] %v486_v15  ;;  %v1043_v14 = vld [vmem:[%s1642_s16 + $0x70] sm:$0xff] (%p1551_p9)  ;;  %v1045_v15 = vld [vmem:[%s1642_s16 + $0x78] sm:$0xff] (%p1551_p9) }
 0x157   : > { %1044 = vst [vmem:[%s1843_s27 + $0xe0] sm:$0xff] (%p1551_p9), %v1043_v14  ;;  %1046 = vst [vmem:[%s1843_s27 + $0xf0] sm:$0xff] (%p1551_p9), %v1045_v15 }
 0x158   : > { %1154 = vst [vmem:[%s1843_s27 + $0x450] sm:$0xff] (%p1551_p9), %v1153_v5 }
 0x159   : > { %v519_v16 = vpop.trf.xlu1  ;;  %v487_v17 = vpop.trf.xlu0  ;;  %v1155_v6 = vld [vmem:[%s1642_s16 + $0x230] sm:$0xff] (%p1551_p9) }
 0x15a   : > { %679 = vst [vmem:[%s1642_s16 + $0x2c0] sm:$0xff] %v519_v16  ;;  %663 = vst [vmem:[%s1642_s16 + $0x240] sm:$0xff] %v487_v17  ;;  %v1047_v16 = vld [vmem:[%s1642_s16 + $0x80] sm:$0xff] (%p1551_p9)  ;;  %v1049_v17 = vld [vmem:[%s1642_s16 + $0x88] sm:$0xff] (%p1551_p9) }
 0x15b   : > { %1048 = vst [vmem:[%s1843_s27 + $0x100] sm:$0xff] (%p1551_p9), %v1047_v16  ;;  %1050 = vst [vmem:[%s1843_s27 + $0x110] sm:$0xff] (%p1551_p9), %v1049_v17  ;;  %v1175_v16 = vld [vmem:[%s1642_s16 + $0x280] sm:$0xff] (%p1551_p9)  ;;  %v1177_v17 = vld [vmem:[%s1642_s16 + $0x288] sm:$0xff] (%p1551_p9) }
 0x15c   : > { %1156 = vst [vmem:[%s1843_s27 + $0x460] sm:$0xff] (%p1551_p9), %v1155_v6  ;;  %1176 = vst [vmem:[%s1843_s27 + $0x500] sm:$0xff] (%p1551_p9), %v1175_v16 }
 0x15d   : > { %v520_v18 = vpop.trf.xlu1  ;;  %v488_v19 = vpop.trf.xlu0  ;;  %v1157_v7 = vld [vmem:[%s1642_s16 + $0x238] sm:$0xff] (%p1551_p9)  ;;  %1178 = vst [vmem:[%s1843_s27 + $0x510] sm:$0xff] (%p1551_p9), %v1177_v17 }
 0x15e   : > { %680 = vst [vmem:[%s1642_s16 + $0x2c8] sm:$0xff] %v520_v18  ;;  %664 = vst [vmem:[%s1642_s16 + $0x248] sm:$0xff] %v488_v19  ;;  %v1051_v18 = vld [vmem:[%s1642_s16 + $0x90] sm:$0xff] (%p1551_p9)  ;;  %v1053_v19 = vld [vmem:[%s1642_s16 + $0x98] sm:$0xff] (%p1551_p9) }
 0x15f   : > { %1052 = vst [vmem:[%s1843_s27 + $0x120] sm:$0xff] (%p1551_p9), %v1051_v18  ;;  %1054 = vst [vmem:[%s1843_s27 + $0x130] sm:$0xff] (%p1551_p9), %v1053_v19  ;;  %v1179_v18 = vld [vmem:[%s1642_s16 + $0x290] sm:$0xff] (%p1551_p9)  ;;  %v1181_v19 = vld [vmem:[%s1642_s16 + $0x298] sm:$0xff] (%p1551_p9) }
 0x160   : > { %1158 = vst [vmem:[%s1843_s27 + $0x470] sm:$0xff] (%p1551_p9), %v1157_v7  ;;  %1180 = vst [vmem:[%s1843_s27 + $0x520] sm:$0xff] (%p1551_p9), %v1179_v18 }
 0x161   : > { %v521_v20 = vpop.trf.xlu1  ;;  %v489_v21 = vpop.trf.xlu0  ;;  %v1159_v8 = vld [vmem:[%s1642_s16 + $0x240] sm:$0xff] (%p1551_p9)  ;;  %1182 = vst [vmem:[%s1843_s27 + $0x530] sm:$0xff] (%p1551_p9), %v1181_v19 }
 0x162   : > { %681 = vst [vmem:[%s1642_s16 + $0x2d0] sm:$0xff] %v521_v20  ;;  %665 = vst [vmem:[%s1642_s16 + $0x250] sm:$0xff] %v489_v21  ;;  %v1055_v20 = vld [vmem:[%s1642_s16 + $0xa0] sm:$0xff] (%p1551_p9)  ;;  %v1057_v21 = vld [vmem:[%s1642_s16 + $0xa8] sm:$0xff] (%p1551_p9) }
 0x163   : > { %1056 = vst [vmem:[%s1843_s27 + $0x140] sm:$0xff] (%p1551_p9), %v1055_v20  ;;  %1058 = vst [vmem:[%s1843_s27 + $0x150] sm:$0xff] (%p1551_p9), %v1057_v21  ;;  %v1183_v20 = vld [vmem:[%s1642_s16 + $0x2a0] sm:$0xff] (%p1551_p9)  ;;  %v1185_v21 = vld [vmem:[%s1642_s16 + $0x2a8] sm:$0xff] (%p1551_p9) }
 0x164   : > { %1160 = vst [vmem:[%s1843_s27 + $0x480] sm:$0xff] (%p1551_p9), %v1159_v8  ;;  %1184 = vst [vmem:[%s1843_s27 + $0x540] sm:$0xff] (%p1551_p9), %v1183_v20 }
 0x165   : > { %v522_v22 = vpop.trf.xlu1  ;;  %v490_v23 = vpop.trf.xlu0  ;;  %v1161_v9 = vld [vmem:[%s1642_s16 + $0x248] sm:$0xff] (%p1551_p9)  ;;  %1186 = vst [vmem:[%s1843_s27 + $0x550] sm:$0xff] (%p1551_p9), %v1185_v21 }
 0x166   : > { %682 = vst [vmem:[%s1642_s16 + $0x2d8] sm:$0xff] %v522_v22  ;;  %666 = vst [vmem:[%s1642_s16 + $0x258] sm:$0xff] %v490_v23  ;;  %v1059_v22 = vld [vmem:[%s1642_s16 + $0xb0] sm:$0xff] (%p1551_p9)  ;;  %v1061_v23 = vld [vmem:[%s1642_s16 + $0xb8] sm:$0xff] (%p1551_p9) }
 0x167   : > { %1060 = vst [vmem:[%s1843_s27 + $0x160] sm:$0xff] (%p1551_p9), %v1059_v22  ;;  %1062 = vst [vmem:[%s1843_s27 + $0x170] sm:$0xff] (%p1551_p9), %v1061_v23  ;;  %v1187_v22 = vld [vmem:[%s1642_s16 + $0x2b0] sm:$0xff] (%p1551_p9)  ;;  %v1189_v23 = vld [vmem:[%s1642_s16 + $0x2b8] sm:$0xff] (%p1551_p9) }
 0x168   : > { %1162 = vst [vmem:[%s1843_s27 + $0x490] sm:$0xff] (%p1551_p9), %v1161_v9  ;;  %1188 = vst [vmem:[%s1843_s27 + $0x560] sm:$0xff] (%p1551_p9), %v1187_v22 }
 0x169   : > { %v523_v24 = vpop.trf.xlu1  ;;  %v491_v25 = vpop.trf.xlu0  ;;  %v1163_v10 = vld [vmem:[%s1642_s16 + $0x250] sm:$0xff] (%p1551_p9)  ;;  %1190 = vst [vmem:[%s1843_s27 + $0x570] sm:$0xff] (%p1551_p9), %v1189_v23 }
 0x16a   : > { %683 = vst [vmem:[%s1642_s16 + $0x2e0] sm:$0xff] %v523_v24  ;;  %667 = vst [vmem:[%s1642_s16 + $0x260] sm:$0xff] %v491_v25  ;;  %v1063_v24 = vld [vmem:[%s1642_s16 + $0xc0] sm:$0xff] (%p1551_p9)  ;;  %v1065_v25 = vld [vmem:[%s1642_s16 + $0xc8] sm:$0xff] (%p1551_p9) }
 0x16b   : > { %1064 = vst [vmem:[%s1843_s27 + $0x180] sm:$0xff] (%p1551_p9), %v1063_v24  ;;  %1066 = vst [vmem:[%s1843_s27 + $0x190] sm:$0xff] (%p1551_p9), %v1065_v25  ;;  %v1191_v24 = vld [vmem:[%s1642_s16 + $0x2c0] sm:$0xff] (%p1551_p9)  ;;  %v1193_v25 = vld [vmem:[%s1642_s16 + $0x2c8] sm:$0xff] (%p1551_p9) }
 0x16c   : > { %1164 = vst [vmem:[%s1843_s27 + $0x4a0] sm:$0xff] (%p1551_p9), %v1163_v10  ;;  %1192 = vst [vmem:[%s1843_s27 + $0x580] sm:$0xff] (%p1551_p9), %v1191_v24 }
 0x16d   : > { %v524_v26 = vpop.trf.xlu1  ;;  %v492_v27 = vpop.trf.xlu0  ;;  %v1165_v11 = vld [vmem:[%s1642_s16 + $0x258] sm:$0xff] (%p1551_p9)  ;;  %1194 = vst [vmem:[%s1843_s27 + $0x590] sm:$0xff] (%p1551_p9), %v1193_v25 }
 0x16e   : > { %684 = vst [vmem:[%s1642_s16 + $0x2e8] sm:$0xff] %v524_v26  ;;  %668 = vst [vmem:[%s1642_s16 + $0x268] sm:$0xff] %v492_v27  ;;  %v1067_v26 = vld [vmem:[%s1642_s16 + $0xd0] sm:$0xff] (%p1551_p9)  ;;  %v1069_v27 = vld [vmem:[%s1642_s16 + $0xd8] sm:$0xff] (%p1551_p9) }
 0x16f   : > { %1068 = vst [vmem:[%s1843_s27 + $0x1a0] sm:$0xff] (%p1551_p9), %v1067_v26  ;;  %1070 = vst [vmem:[%s1843_s27 + $0x1b0] sm:$0xff] (%p1551_p9), %v1069_v27  ;;  %v1195_v26 = vld [vmem:[%s1642_s16 + $0x2d0] sm:$0xff] (%p1551_p9)  ;;  %v1197_v27 = vld [vmem:[%s1642_s16 + $0x2d8] sm:$0xff] (%p1551_p9) }
 0x170   : > { %1166 = vst [vmem:[%s1843_s27 + $0x4b0] sm:$0xff] (%p1551_p9), %v1165_v11  ;;  %1196 = vst [vmem:[%s1843_s27 + $0x5a0] sm:$0xff] (%p1551_p9), %v1195_v26 }
 0x171   : > { %v525_v28 = vpop.trf.xlu1  ;;  %v493_v29 = vpop.trf.xlu0  ;;  %v1167_v12 = vld [vmem:[%s1642_s16 + $0x260] sm:$0xff] (%p1551_p9)  ;;  %1198 = vst [vmem:[%s1843_s27 + $0x5b0] sm:$0xff] (%p1551_p9), %v1197_v27 }
 0x172   : > { %685 = vst [vmem:[%s1642_s16 + $0x2f0] sm:$0xff] %v525_v28  ;;  %669 = vst [vmem:[%s1642_s16 + $0x270] sm:$0xff] %v493_v29  ;;  %v1071_v28 = vld [vmem:[%s1642_s16 + $0xe0] sm:$0xff] (%p1551_p9)  ;;  %v1073_v29 = vld [vmem:[%s1642_s16 + $0xe8] sm:$0xff] (%p1551_p9) }
 0x173   : > { %1072 = vst [vmem:[%s1843_s27 + $0x1c0] sm:$0xff] (%p1551_p9), %v1071_v28  ;;  %1074 = vst [vmem:[%s1843_s27 + $0x1d0] sm:$0xff] (%p1551_p9), %v1073_v29  ;;  %v1199_v28 = vld [vmem:[%s1642_s16 + $0x2e0] sm:$0xff] (%p1551_p9) }
 0x174   : > { %1168 = vst [vmem:[%s1843_s27 + $0x4c0] sm:$0xff] (%p1551_p9), %v1167_v12  ;;  %1200 = vst [vmem:[%s1843_s27 + $0x5c0] sm:$0xff] (%p1551_p9), %v1199_v28 }
 0x175   : > { %v526_v30 = vpop.trf.xlu1  ;;  %v494_v31 = vpop.trf.xlu0  ;;  %v1169_v13 = vld [vmem:[%s1642_s16 + $0x268] sm:$0xff] (%p1551_p9) }
 0x176   : > { %686 = vst [vmem:[%s1642_s16 + $0x2f8] sm:$0xff] %v526_v30  ;;  %670 = vst [vmem:[%s1642_s16 + $0x278] sm:$0xff] %v494_v31  ;;  %v1075_v30 = vld [vmem:[%s1642_s16 + $0xf0] sm:$0xff] (%p1551_p9)  ;;  %v1077_v31 = vld [vmem:[%s1642_s16 + $0xf8] sm:$0xff] (%p1551_p9) }
 0x177   : > { %1076 = vst [vmem:[%s1843_s27 + $0x1e0] sm:$0xff] (%p1551_p9), %v1075_v30  ;;  %1078 = vst [vmem:[%s1843_s27 + $0x1f0] sm:$0xff] (%p1551_p9), %v1077_v31  ;;  %v1201_v29 = vld [vmem:[%s1642_s16 + $0x2e8] sm:$0xff] (%p1551_p9) }
 0x178   : > { %1170 = vst [vmem:[%s1843_s27 + $0x4d0] sm:$0xff] (%p1551_p9), %v1169_v13  ;;  %1202 = vst [vmem:[%s1843_s27 + $0x5d0] sm:$0xff] (%p1551_p9), %v1201_v29 }
 0x179   : > { %v575_v32 = vpop.trf.xlu1  ;;  %v543_v33 = vpop.trf.xlu0  ;;  %v1171_v14 = vld [vmem:[%s1642_s16 + $0x270] sm:$0xff] (%p1551_p9) }
 0x17a   : > { %703 = vst [vmem:[%s1642_s16 + $0x380] sm:$0xff] %v575_v32  ;;  %687 = vst [vmem:[%s1642_s16 + $0x300] sm:$0xff] %v543_v33  ;;  %v1079_v32 = vld [vmem:[%s1642_s16 + $0x100] sm:$0xff] (%p1551_p9)  ;;  %v1081_v33 = vld [vmem:[%s1642_s16 + $0x108] sm:$0xff] (%p1551_p9) }
 0x17b   : > { %1080 = vst [vmem:[%s1843_s27 + $0x200] sm:$0xff] (%p1551_p9), %v1079_v32  ;;  %1082 = vst [vmem:[%s1843_s27 + $0x210] sm:$0xff] (%p1551_p9), %v1081_v33  ;;  %v1203_v30 = vld [vmem:[%s1642_s16 + $0x2f0] sm:$0xff] (%p1551_p9) }
 0x17c   : > { %1172 = vst [vmem:[%s1843_s27 + $0x4e0] sm:$0xff] (%p1551_p9), %v1171_v14  ;;  %1204 = vst [vmem:[%s1843_s27 + $0x5e0] sm:$0xff] (%p1551_p9), %v1203_v30 }
 0x17d   : > { %v576_v34 = vpop.trf.xlu1  ;;  %v544_v35 = vpop.trf.xlu0  ;;  %v1173_v15 = vld [vmem:[%s1642_s16 + $0x278] sm:$0xff] (%p1551_p9) }
 0x17e   : > { %704 = vst [vmem:[%s1642_s16 + $0x388] sm:$0xff] %v576_v34  ;;  %688 = vst [vmem:[%s1642_s16 + $0x308] sm:$0xff] %v544_v35  ;;  %v1083_v34 = vld [vmem:[%s1642_s16 + $0x110] sm:$0xff] (%p1551_p9)  ;;  %v1085_v35 = vld [vmem:[%s1642_s16 + $0x118] sm:$0xff] (%p1551_p9) }
 0x17f   : > { %1084 = vst [vmem:[%s1843_s27 + $0x220] sm:$0xff] (%p1551_p9), %v1083_v34  ;;  %1086 = vst [vmem:[%s1843_s27 + $0x230] sm:$0xff] (%p1551_p9), %v1085_v35  ;;  %v1205_v31 = vld [vmem:[%s1642_s16 + $0x2f8] sm:$0xff] (%p1551_p9) }
 0x180   : > { %1174 = vst [vmem:[%s1843_s27 + $0x4f0] sm:$0xff] (%p1551_p9), %v1173_v15  ;;  %1206 = vst [vmem:[%s1843_s27 + $0x5f0] sm:$0xff] (%p1551_p9), %v1205_v31 }
 0x181   : > { %v577_v36 = vpop.trf.xlu1  ;;  %v545_v37 = vpop.trf.xlu0  ;;  %v1207_v32 = vld [vmem:[%s1642_s16 + $0x300] sm:$0xff] (%p1551_p9) }
 0x182   : > { %705 = vst [vmem:[%s1642_s16 + $0x390] sm:$0xff] %v577_v36  ;;  %689 = vst [vmem:[%s1642_s16 + $0x310] sm:$0xff] %v545_v37  ;;  %v1087_v36 = vld [vmem:[%s1642_s16 + $0x120] sm:$0xff] (%p1551_p9)  ;;  %v1089_v37 = vld [vmem:[%s1642_s16 + $0x128] sm:$0xff] (%p1551_p9) }
 0x183   : > { %1088 = vst [vmem:[%s1843_s27 + $0x240] sm:$0xff] (%p1551_p9), %v1087_v36  ;;  %1090 = vst [vmem:[%s1843_s27 + $0x250] sm:$0xff] (%p1551_p9), %v1089_v37 }
 0x184   : > { %1208 = vst [vmem:[%s1843_s27 + $0x600] sm:$0xff] (%p1551_p9), %v1207_v32 }
 0x185   : > { %v578_v38 = vpop.trf.xlu1  ;;  %v546_v39 = vpop.trf.xlu0  ;;  %v1209_v33 = vld [vmem:[%s1642_s16 + $0x308] sm:$0xff] (%p1551_p9) }
 0x186   : > { %706 = vst [vmem:[%s1642_s16 + $0x398] sm:$0xff] %v578_v38  ;;  %690 = vst [vmem:[%s1642_s16 + $0x318] sm:$0xff] %v546_v39  ;;  %v1091_v38 = vld [vmem:[%s1642_s16 + $0x130] sm:$0xff] (%p1551_p9)  ;;  %v1093_v39 = vld [vmem:[%s1642_s16 + $0x138] sm:$0xff] (%p1551_p9) }
 0x187   : > { %1092 = vst [vmem:[%s1843_s27 + $0x260] sm:$0xff] (%p1551_p9), %v1091_v38  ;;  %1094 = vst [vmem:[%s1843_s27 + $0x270] sm:$0xff] (%p1551_p9), %v1093_v39 }
 0x188   : > { %1210 = vst [vmem:[%s1843_s27 + $0x610] sm:$0xff] (%p1551_p9), %v1209_v33 }
 0x189   : > { %v579_v40 = vpop.trf.xlu1  ;;  %v547_v41 = vpop.trf.xlu0  ;;  %v1211_v34 = vld [vmem:[%s1642_s16 + $0x310] sm:$0xff] (%p1551_p9) }
 0x18a   : > { %707 = vst [vmem:[%s1642_s16 + $0x3a0] sm:$0xff] %v579_v40  ;;  %691 = vst [vmem:[%s1642_s16 + $0x320] sm:$0xff] %v547_v41  ;;  %v1095_v40 = vld [vmem:[%s1642_s16 + $0x140] sm:$0xff] (%p1551_p9)  ;;  %v1097_v41 = vld [vmem:[%s1642_s16 + $0x148] sm:$0xff] (%p1551_p9) }
 0x18b   : > { %1096 = vst [vmem:[%s1843_s27 + $0x280] sm:$0xff] (%p1551_p9), %v1095_v40  ;;  %1098 = vst [vmem:[%s1843_s27 + $0x290] sm:$0xff] (%p1551_p9), %v1097_v41 }
 0x18c   : > { %1212 = vst [vmem:[%s1843_s27 + $0x620] sm:$0xff] (%p1551_p9), %v1211_v34 }
 0x18d   : > { %v580_v42 = vpop.trf.xlu1  ;;  %v548_v43 = vpop.trf.xlu0  ;;  %v1213_v35 = vld [vmem:[%s1642_s16 + $0x318] sm:$0xff] (%p1551_p9) }
 0x18e   : > { %708 = vst [vmem:[%s1642_s16 + $0x3a8] sm:$0xff] %v580_v42  ;;  %692 = vst [vmem:[%s1642_s16 + $0x328] sm:$0xff] %v548_v43  ;;  %v1099_v42 = vld [vmem:[%s1642_s16 + $0x150] sm:$0xff] (%p1551_p9)  ;;  %v1101_v43 = vld [vmem:[%s1642_s16 + $0x158] sm:$0xff] (%p1551_p9) }
 0x18f   : > { %1100 = vst [vmem:[%s1843_s27 + $0x2a0] sm:$0xff] (%p1551_p9), %v1099_v42  ;;  %1102 = vst [vmem:[%s1843_s27 + $0x2b0] sm:$0xff] (%p1551_p9), %v1101_v43 }
 0x190   : > { %1214 = vst [vmem:[%s1843_s27 + $0x630] sm:$0xff] (%p1551_p9), %v1213_v35 }
 0x191   : > { %v581_v44 = vpop.trf.xlu1  ;;  %v549_v45 = vpop.trf.xlu0  ;;  %v1215_v36 = vld [vmem:[%s1642_s16 + $0x320] sm:$0xff] (%p1551_p9) }
 0x192   : > { %709 = vst [vmem:[%s1642_s16 + $0x3b0] sm:$0xff] %v581_v44  ;;  %693 = vst [vmem:[%s1642_s16 + $0x330] sm:$0xff] %v549_v45  ;;  %v1103_v44 = vld [vmem:[%s1642_s16 + $0x160] sm:$0xff] (%p1551_p9)  ;;  %v1105_v45 = vld [vmem:[%s1642_s16 + $0x168] sm:$0xff] (%p1551_p9) }
 0x193   : > { %1104 = vst [vmem:[%s1843_s27 + $0x2c0] sm:$0xff] (%p1551_p9), %v1103_v44  ;;  %1106 = vst [vmem:[%s1843_s27 + $0x2d0] sm:$0xff] (%p1551_p9), %v1105_v45 }
 0x194   : > { %1216 = vst [vmem:[%s1843_s27 + $0x640] sm:$0xff] (%p1551_p9), %v1215_v36 }
 0x195   : > { %v582_v46 = vpop.trf.xlu1  ;;  %v550_v47 = vpop.trf.xlu0  ;;  %v1217_v37 = vld [vmem:[%s1642_s16 + $0x328] sm:$0xff] (%p1551_p9) }
 0x196   : > { %710 = vst [vmem:[%s1642_s16 + $0x3b8] sm:$0xff] %v582_v46  ;;  %694 = vst [vmem:[%s1642_s16 + $0x338] sm:$0xff] %v550_v47  ;;  %v1107_v46 = vld [vmem:[%s1642_s16 + $0x170] sm:$0xff] (%p1551_p9)  ;;  %v1109_v47 = vld [vmem:[%s1642_s16 + $0x178] sm:$0xff] (%p1551_p9) }
 0x197   : > { %1108 = vst [vmem:[%s1843_s27 + $0x2e0] sm:$0xff] (%p1551_p9), %v1107_v46  ;;  %1110 = vst [vmem:[%s1843_s27 + $0x2f0] sm:$0xff] (%p1551_p9), %v1109_v47 }
 0x198   : > { %1218 = vst [vmem:[%s1843_s27 + $0x650] sm:$0xff] (%p1551_p9), %v1217_v37 }
 0x199   : > { %v583_v48 = vpop.trf.xlu1  ;;  %v551_v49 = vpop.trf.xlu0  ;;  %v1219_v38 = vld [vmem:[%s1642_s16 + $0x330] sm:$0xff] (%p1551_p9) }
 0x19a   : > { %711 = vst [vmem:[%s1642_s16 + $0x3c0] sm:$0xff] %v583_v48  ;;  %695 = vst [vmem:[%s1642_s16 + $0x340] sm:$0xff] %v551_v49  ;;  %v1111_v48 = vld [vmem:[%s1642_s16 + $0x180] sm:$0xff] (%p1551_p9)  ;;  %v1113_v49 = vld [vmem:[%s1642_s16 + $0x188] sm:$0xff] (%p1551_p9) }
 0x19b   : > { %1112 = vst [vmem:[%s1843_s27 + $0x300] sm:$0xff] (%p1551_p9), %v1111_v48  ;;  %1114 = vst [vmem:[%s1843_s27 + $0x310] sm:$0xff] (%p1551_p9), %v1113_v49  ;;  %v1239_v48 = vld [vmem:[%s1642_s16 + $0x380] sm:$0xff] (%p1551_p9)  ;;  %v1241_v49 = vld [vmem:[%s1642_s16 + $0x388] sm:$0xff] (%p1551_p9) }
 0x19c   : > { %1220 = vst [vmem:[%s1843_s27 + $0x660] sm:$0xff] (%p1551_p9), %v1219_v38  ;;  %1240 = vst [vmem:[%s1843_s27 + $0x700] sm:$0xff] (%p1551_p9), %v1239_v48 }
 0x19d   : > { %v584_v50 = vpop.trf.xlu1  ;;  %v552_v51 = vpop.trf.xlu0  ;;  %v1221_v39 = vld [vmem:[%s1642_s16 + $0x338] sm:$0xff] (%p1551_p9)  ;;  %1242 = vst [vmem:[%s1843_s27 + $0x710] sm:$0xff] (%p1551_p9), %v1241_v49 }
 0x19e   : > { %712 = vst [vmem:[%s1642_s16 + $0x3c8] sm:$0xff] %v584_v50  ;;  %696 = vst [vmem:[%s1642_s16 + $0x348] sm:$0xff] %v552_v51  ;;  %v1115_v50 = vld [vmem:[%s1642_s16 + $0x190] sm:$0xff] (%p1551_p9)  ;;  %v1117_v51 = vld [vmem:[%s1642_s16 + $0x198] sm:$0xff] (%p1551_p9) }
 0x19f   : > { %1116 = vst [vmem:[%s1843_s27 + $0x320] sm:$0xff] (%p1551_p9), %v1115_v50  ;;  %1118 = vst [vmem:[%s1843_s27 + $0x330] sm:$0xff] (%p1551_p9), %v1117_v51  ;;  %v1243_v50 = vld [vmem:[%s1642_s16 + $0x390] sm:$0xff] (%p1551_p9)  ;;  %v1245_v51 = vld [vmem:[%s1642_s16 + $0x398] sm:$0xff] (%p1551_p9) }
 0x1a0   : > { %1222 = vst [vmem:[%s1843_s27 + $0x670] sm:$0xff] (%p1551_p9), %v1221_v39  ;;  %1244 = vst [vmem:[%s1843_s27 + $0x720] sm:$0xff] (%p1551_p9), %v1243_v50 }
 0x1a1   : > { %v585_v52 = vpop.trf.xlu1  ;;  %v553_v53 = vpop.trf.xlu0  ;;  %v1223_v40 = vld [vmem:[%s1642_s16 + $0x340] sm:$0xff] (%p1551_p9)  ;;  %1246 = vst [vmem:[%s1843_s27 + $0x730] sm:$0xff] (%p1551_p9), %v1245_v51 }
 0x1a2   : > { %713 = vst [vmem:[%s1642_s16 + $0x3d0] sm:$0xff] %v585_v52  ;;  %697 = vst [vmem:[%s1642_s16 + $0x350] sm:$0xff] %v553_v53  ;;  %v1119_v52 = vld [vmem:[%s1642_s16 + $0x1a0] sm:$0xff] (%p1551_p9)  ;;  %v1121_v53 = vld [vmem:[%s1642_s16 + $0x1a8] sm:$0xff] (%p1551_p9) }
 0x1a3   : > { %1120 = vst [vmem:[%s1843_s27 + $0x340] sm:$0xff] (%p1551_p9), %v1119_v52  ;;  %1122 = vst [vmem:[%s1843_s27 + $0x350] sm:$0xff] (%p1551_p9), %v1121_v53  ;;  %v1247_v52 = vld [vmem:[%s1642_s16 + $0x3a0] sm:$0xff] (%p1551_p9)  ;;  %v1249_v53 = vld [vmem:[%s1642_s16 + $0x3a8] sm:$0xff] (%p1551_p9) }
 0x1a4   : > { %1224 = vst [vmem:[%s1843_s27 + $0x680] sm:$0xff] (%p1551_p9), %v1223_v40  ;;  %1248 = vst [vmem:[%s1843_s27 + $0x740] sm:$0xff] (%p1551_p9), %v1247_v52 }
 0x1a5   : > { %v586_v54 = vpop.trf.xlu1  ;;  %v554_v55 = vpop.trf.xlu0  ;;  %v1225_v41 = vld [vmem:[%s1642_s16 + $0x348] sm:$0xff] (%p1551_p9)  ;;  %1250 = vst [vmem:[%s1843_s27 + $0x750] sm:$0xff] (%p1551_p9), %v1249_v53 }
 0x1a6   : > { %714 = vst [vmem:[%s1642_s16 + $0x3d8] sm:$0xff] %v586_v54  ;;  %698 = vst [vmem:[%s1642_s16 + $0x358] sm:$0xff] %v554_v55  ;;  %v1123_v54 = vld [vmem:[%s1642_s16 + $0x1b0] sm:$0xff] (%p1551_p9)  ;;  %v1125_v55 = vld [vmem:[%s1642_s16 + $0x1b8] sm:$0xff] (%p1551_p9) }
 0x1a7   : > { %1124 = vst [vmem:[%s1843_s27 + $0x360] sm:$0xff] (%p1551_p9), %v1123_v54  ;;  %1126 = vst [vmem:[%s1843_s27 + $0x370] sm:$0xff] (%p1551_p9), %v1125_v55  ;;  %v1251_v54 = vld [vmem:[%s1642_s16 + $0x3b0] sm:$0xff] (%p1551_p9)  ;;  %v1253_v55 = vld [vmem:[%s1642_s16 + $0x3b8] sm:$0xff] (%p1551_p9) }
 0x1a8   : > { %1226 = vst [vmem:[%s1843_s27 + $0x690] sm:$0xff] (%p1551_p9), %v1225_v41  ;;  %1252 = vst [vmem:[%s1843_s27 + $0x760] sm:$0xff] (%p1551_p9), %v1251_v54 }
 0x1a9   : > { %v587_v56 = vpop.trf.xlu1  ;;  %v555_v57 = vpop.trf.xlu0  ;;  %v1227_v42 = vld [vmem:[%s1642_s16 + $0x350] sm:$0xff] (%p1551_p9)  ;;  %1254 = vst [vmem:[%s1843_s27 + $0x770] sm:$0xff] (%p1551_p9), %v1253_v55 }
 0x1aa   : > { %715 = vst [vmem:[%s1642_s16 + $0x3e0] sm:$0xff] %v587_v56  ;;  %699 = vst [vmem:[%s1642_s16 + $0x360] sm:$0xff] %v555_v57  ;;  %v1127_v56 = vld [vmem:[%s1642_s16 + $0x1c0] sm:$0xff] (%p1551_p9)  ;;  %v1129_v57 = vld [vmem:[%s1642_s16 + $0x1c8] sm:$0xff] (%p1551_p9) }
 0x1ab   : > { %1128 = vst [vmem:[%s1843_s27 + $0x380] sm:$0xff] (%p1551_p9), %v1127_v56  ;;  %1130 = vst [vmem:[%s1843_s27 + $0x390] sm:$0xff] (%p1551_p9), %v1129_v57  ;;  %v1255_v56 = vld [vmem:[%s1642_s16 + $0x3c0] sm:$0xff] (%p1551_p9)  ;;  %v1257_v57 = vld [vmem:[%s1642_s16 + $0x3c8] sm:$0xff] (%p1551_p9) }
 0x1ac   : > { %1228 = vst [vmem:[%s1843_s27 + $0x6a0] sm:$0xff] (%p1551_p9), %v1227_v42  ;;  %1256 = vst [vmem:[%s1843_s27 + $0x780] sm:$0xff] (%p1551_p9), %v1255_v56 }
 0x1ad   : > { %v588_v58 = vpop.trf.xlu1  ;;  %v556_v59 = vpop.trf.xlu0  ;;  %v1229_v43 = vld [vmem:[%s1642_s16 + $0x358] sm:$0xff] (%p1551_p9)  ;;  %1258 = vst [vmem:[%s1843_s27 + $0x790] sm:$0xff] (%p1551_p9), %v1257_v57 }
 0x1ae   : > { %716 = vst [vmem:[%s1642_s16 + $0x3e8] sm:$0xff] %v588_v58  ;;  %700 = vst [vmem:[%s1642_s16 + $0x368] sm:$0xff] %v556_v59  ;;  %v1131_v58 = vld [vmem:[%s1642_s16 + $0x1d0] sm:$0xff] (%p1551_p9)  ;;  %v1133_v59 = vld [vmem:[%s1642_s16 + $0x1d8] sm:$0xff] (%p1551_p9) }
 0x1af   : > { %1132 = vst [vmem:[%s1843_s27 + $0x3a0] sm:$0xff] (%p1551_p9), %v1131_v58  ;;  %1134 = vst [vmem:[%s1843_s27 + $0x3b0] sm:$0xff] (%p1551_p9), %v1133_v59  ;;  %v1259_v58 = vld [vmem:[%s1642_s16 + $0x3d0] sm:$0xff] (%p1551_p9)  ;;  %v1261_v59 = vld [vmem:[%s1642_s16 + $0x3d8] sm:$0xff] (%p1551_p9) }
 0x1b0   : > { %725 = sbr.rel (!%p1551_p9) target bundleno = 448 (0x1c0), region = 32  ;;  %1230 = vst [vmem:[%s1843_s27 + $0x6b0] sm:$0xff] (%p1551_p9), %v1229_v43  ;;  %1260 = vst [vmem:[%s1843_s27 + $0x7a0] sm:$0xff] (%p1551_p9), %v1259_v58 }
 0x1b1   : > { %v589_v60 = vpop.trf.xlu1  ;;  %v557_v61 = vpop.trf.xlu0  ;;  %v1231_v44 = vld [vmem:[%s1642_s16 + $0x360] sm:$0xff] (%p1551_p9)  ;;  %1262 = vst [vmem:[%s1843_s27 + $0x7b0] sm:$0xff] (%p1551_p9), %v1261_v59 }
 0x1b2   : > { %717 = vst [vmem:[%s1642_s16 + $0x3f0] sm:$0xff] %v589_v60  ;;  %701 = vst [vmem:[%s1642_s16 + $0x370] sm:$0xff] %v557_v61  ;;  %v1135_v60 = vld [vmem:[%s1642_s16 + $0x1e0] sm:$0xff] (%p1551_p9)  ;;  %v1137_v61 = vld [vmem:[%s1642_s16 + $0x1e8] sm:$0xff] (%p1551_p9) }
 0x1b3   : > { %1136 = vst [vmem:[%s1843_s27 + $0x3c0] sm:$0xff] (%p1551_p9), %v1135_v60  ;;  %1138 = vst [vmem:[%s1843_s27 + $0x3d0] sm:$0xff] (%p1551_p9), %v1137_v61  ;;  %v1263_v60 = vld [vmem:[%s1642_s16 + $0x3e0] sm:$0xff] (%p1551_p9) }
 0x1b4   : > { %1232 = vst [vmem:[%s1843_s27 + $0x6c0] sm:$0xff] (%p1551_p9), %v1231_v44  ;;  %1264 = vst [vmem:[%s1843_s27 + $0x7c0] sm:$0xff] (%p1551_p9), %v1263_v60 }
 0x1b5   : > { %v590_v62 = vpop.trf.xlu1  ;;  %v558_v63 = vpop.trf.xlu0  ;;  %v1233_v45 = vld [vmem:[%s1642_s16 + $0x368] sm:$0xff] (%p1551_p9) }
 0x1b6   : > { %718 = vst [vmem:[%s1642_s16 + $0x3f8] sm:$0xff] %v590_v62  ;;  %702 = vst [vmem:[%s1642_s16 + $0x378] sm:$0xff] %v558_v63  ;;  %v1139_v62 = vld [vmem:[%s1642_s16 + $0x1f0] sm:$0xff] (%p1551_p9)  ;;  %v1141_v63 = vld [vmem:[%s1642_s16 + $0x1f8] sm:$0xff] (%p1551_p9) }
 0x1b7   : > { %1140 = vst [vmem:[%s1843_s27 + $0x3e0] sm:$0xff] %v1139_v62  ;;  %1142 = vst [vmem:[%s1843_s27 + $0x3f0] sm:$0xff] %v1141_v63  ;;  %v1265_v61 = vld [vmem:[%s1642_s16 + $0x3e8] sm:$0xff] }
 0x1b8   : > { %1234 = vst [vmem:[%s1843_s27 + $0x6d0] sm:$0xff] %v1233_v45  ;;  %1266 = vst [vmem:[%s1843_s27 + $0x7d0] sm:$0xff] %v1265_v61 }
 0x1b9   : > { %v1235_v46 = vld [vmem:[%s1642_s16 + $0x370] sm:$0xff] }
 0x1ba   : > { %1236 = vst [vmem:[%s1843_s27 + $0x6e0] sm:$0xff] %v1235_v46  ;;  %v1267_v62 = vld [vmem:[%s1642_s16 + $0x3f0] sm:$0xff] }
 0x1bb   : > { %1268 = vst [vmem:[%s1843_s27 + $0x7e0] sm:$0xff] %v1267_v62 }
 0x1bd   : > { %v1237_v47 = vld [vmem:[%s1642_s16 + $0x378] sm:$0xff] }
 0x1be   : > { %1238 = vst [vmem:[%s1843_s27 + $0x6f0] sm:$0xff] %v1237_v47  ;;  %v1269_v63 = vld [vmem:[%s1642_s16 + $0x3f8] sm:$0xff] }
 0x1bf   : > { %1270 = vst [vmem:[%s1843_s27 + $0x7f0] sm:$0xff] %v1269_v63 }
 0x1c0 PF: > { %s14_s11 = sadd.s32 1, %s1488_s11   ;;  %s2120_s6 = smov %s1472_s7 }
 0x1c1   : > { %p11_p2 = scmp.ge.s32.totalorder %s14_s11, 4   ;;  %s2121_s7 = smov %s1476_s8 }
 0x1c2   : > { %s2122_s8 = smov %s1549_s17  ;;  %s2123_s9 = smov %s1484_s10 }
 0x1c3   : > { %s2124_s10 = smov %s2126_s13  ;;  %13 = sbr.rel (!%p11_p2) target bundleno = 4 (0x4), region = 107 }
 0x1ca   :  { %1286 = vsyncpa [#allocation3], 1 }
 0x1cb   :  { %1288 = vsyncpa [#allocation3 + $0x1], 1 }

</bundles_post_ra>
